<compile_context>
chip_gen: v5e
topology: v5e:2x2
jax: 0.10.0
libtpu: 0.0.40
codegen_flags: <defaults>
</compile_context>

<pallas_src>
import functools
import math

import jax
import jax.numpy as jnp
from jax.experimental import pallas as pl
from jax.experimental.pallas import tpu as pltpu

_SQRT1_2 = 0.7071067811865476


# ------------------------------ in-kernel math ------------------------------ #

def _layernorm(x, w, b, eps):
    mu = jnp.mean(x, axis=-1, keepdims=True)
    d = x - mu
    var = jnp.mean(d * d, axis=-1, keepdims=True)
    return d * jax.lax.rsqrt(var + eps) * w + b


def _erf_approx(x):
    # Abramowitz & Stegun 7.1.26, |error| < 1.5e-7 -> keeps nn.GELU()'s exact-erf
    # semantics with only exp/abs/select (lowers on VPU/EUP on all generations).
    a1, a2, a3, a4, a5 = (0.254829592, -0.284496736, 1.421413741,
                          -1.453152027, 1.061405429)
    p = 0.3275911
    ax = jnp.abs(x)
    t = 1.0 / (1.0 + p * ax)
    poly = ((((a5 * t + a4) * t + a3) * t + a2) * t + a1) * t
    y = 1.0 - poly * jnp.exp(-ax * ax)
    return jnp.where(x < 0.0, -y, y)


def _gelu_exact(x):
    return 0.5 * x * (1.0 + _erf_approx(x * _SQRT1_2))


# ------------------------------- Pallas kernel ------------------------------ #

def _layer_kernel(x_ref,
                  ln1g_ref, ln1b_ref, wq_ref, bq_ref, wkv_ref, bv_ref,
                  wo_ref, bo_ref, ln2g_ref, ln2b_ref, w1_ref, b1_ref,
                  w2_ref, b2_ref,
                  lnhg_ref, lnhb_ref, wh_ref, bh_ref,
                  o_ref, x_scr, ctx_scr, *, heads, eps):
    """One transformer layer per grid step; classification head at the last step.

    grid = (N, depth); per-layer weight refs hold layer `l` (streamed via index_map).
    x_ref   : (1, S, D) input block (constant across l for a fixed n)
    o_ref   : (1, C, S) output block (written only at l == depth-1)
    x_scr   : (S, D) f32 VMEM scratch carrying the residual stream across layers
    ctx_scr : (S, D) bf16 VMEM scratch assembling per-head attention contexts
    """
    l = pl.program_id(1)

    @pl.when(l == 0)
    def _():
        x_scr[...] = x_ref[0]

    x = x_scr[...]                                   # (S, D) f32
    D = x.shape[-1]
    hd = D // heads
    scale = 1.0 / math.sqrt(float(hd))
    bf16 = jnp.bfloat16

    # ---------------- attention block: query path LN(x), key/value raw x -------
    xq = _layernorm(x, ln1g_ref[0], ln1b_ref[0], eps)
    # Fused full-width projections (bf16 operands, f32 accumulation).
    q_all = jnp.dot(xq.astype(bf16), wq_ref[0],
                    preferred_element_type=jnp.float32) + bq_ref[0]      # (S, D)
    kv = jnp.dot(x.astype(bf16), wkv_ref[0],
                 preferred_element_type=jnp.float32)                      # (S, 2D)
    k_all = kv[:, :D]                                # bk omitted: softmax-invariant
    v_all = kv[:, D:] + bv_ref[0]

    # TODO(synk): per-head (S,S) scores in VMEM; flash-style KV tiling for long S.
    for h in range(heads):                           # static unroll (small H)
        sl = slice(h * hd, (h + 1) * hd)
        q = q_all[:, sl].astype(bf16)
        k = k_all[:, sl].astype(bf16)
        v = v_all[:, sl].astype(bf16)
        s = jnp.einsum('qd,kd->qk', q, k,
                       preferred_element_type=jnp.float32) * scale       # (S, S)
        s = s - jnp.max(s, axis=-1, keepdims=True)
        p = jnp.exp(s)
        p = p * pl.reciprocal(jnp.sum(p, axis=-1, keepdims=True), approx=True)
        ctx = jnp.dot(p.astype(bf16), v,
                      preferred_element_type=jnp.float32)                 # (S, hd)
        # Static lane-offset write; one full-width out-proj matmul afterwards.
        ctx_scr[:, sl] = ctx.astype(bf16)

    attn = jnp.dot(ctx_scr[...], wo_ref[0],
                   preferred_element_type=jnp.float32) + bo_ref[0]        # (S, D)
    x = x + attn

    # -------------------------------- MLP block --------------------------------
    xn = _layernorm(x, ln2g_ref[0], ln2b_ref[0], eps)
    h1 = jnp.dot(xn.astype(bf16), w1_ref[0],
                 preferred_element_type=jnp.float32) + b1_ref[0]
    h1 = _gelu_exact(h1)
    x = x + jnp.dot(h1.astype(bf16), w2_ref[0],
                    preferred_element_type=jnp.float32) + b2_ref[0]

    x_scr[...] = x

    # ------------- classification head, emitted as (num_classes, seq) ----------
    @pl.when(l == pl.num_programs(1) - 1)
    def _():
        hn = _layernorm(x, lnhg_ref[...], lnhb_ref[...], eps)
        logits_t = jnp.einsum('cd,sd->cs', wh_ref[...], hn.astype(bf16),
                              preferred_element_type=jnp.float32) + bh_ref[...]
        o_ref[0] = logits_t


# ------------------------------ parameter glue ------------------------------ #

def init_params(key, *, num_classes, dim, depth, heads, mlp_dim):
    assert dim % heads == 0

    def dense(k, out_d, in_d):
        return jax.random.normal(k, (out_d, in_d), jnp.float32) / jnp.sqrt(float(in_d))

    def vec(k, n, scale=0.1):
        return scale * jax.random.normal(k, (n,), jnp.float32)

    keys = jax.random.split(key, depth + 1)
    layers = []
    for l in range(depth):
        ks = jax.random.split(keys[l], 16)
        layers.append(dict(
            ln1_w=1.0 + vec(ks[0], dim), ln1_b=vec(ks[1], dim),
            wq=dense(ks[2], dim, dim), bq=vec(ks[3], dim),
            wk=dense(ks[4], dim, dim), bk=vec(ks[5], dim),
            wv=dense(ks[6], dim, dim), bv=vec(ks[7], dim),
            wo=dense(ks[8], dim, dim), bo=vec(ks[9], dim),
            ln2_w=1.0 + vec(ks[10], dim), ln2_b=vec(ks[11], dim),
            w1=dense(ks[12], mlp_dim, dim), b1=vec(ks[13], mlp_dim),
            w2=dense(ks[14], dim, mlp_dim), b2=vec(ks[15], dim),
        ))
    kh = jax.random.split(keys[depth], 4)
    return dict(layers=layers,
                lnh_w=1.0 + vec(kh[0], dim), lnh_b=vec(kh[1], dim),
                head_w=dense(kh[2], num_classes, dim), head_b=vec(kh[3], num_classes))


def _pack_params(params):
    """Stack per-layer weights (leading depth axis); matmul weights in bf16.

    Q weight is kept separate ((L,D,D), input is LayerNorm(x)); K and V are fused
    into one (L,D,2D) slab (input is raw x). The key bias bk is dropped (softmax
    output is exactly invariant to it). Biases / LN params stay f32.
    """
    layers = params["layers"]
    bf = jnp.bfloat16

    def stk(name):
        return jnp.stack([p[name] for p in layers])

    per_layer = (
        stk("ln1_w")[:, None, :], stk("ln1_b")[:, None, :],
        jnp.stack([p["wq"].T for p in layers]).astype(bf),
        stk("bq")[:, None, :],
        jnp.stack([jnp.concatenate([p["wk"].T, p["wv"].T], axis=1)
                   for p in layers]).astype(bf),
        stk("bv")[:, None, :],
        jnp.stack([p["wo"].T for p in layers]).astype(bf),
        stk("bo")[:, None, :],
        stk("ln2_w")[:, None, :], stk("ln2_b")[:, None, :],
        jnp.stack([p["w1"].T for p in layers]).astype(bf),
        stk("b1")[:, None, :],
        jnp.stack([p["w2"].T for p in layers]).astype(bf),
        stk("b2")[:, None, :],
    )
    head = (
        params["lnh_w"][None, :], params["lnh_b"][None, :],
        params["head_w"].astype(bf), params["head_b"][:, None],
    )
    return per_layer, head


def _layer_spec(arr):
    """One layer's slab per grid step: streamed (and double-buffered) over l."""
    rest = (0,) * (arr.ndim - 1)
    return pl.BlockSpec((1,) + arr.shape[1:], lambda n, l, _r=rest: (l,) + _r)


def _const_spec(arr):
    """Whole array, constant index -> fetched once, stays VMEM-resident."""
    zero = (0,) * arr.ndim
    return pl.BlockSpec(arr.shape, lambda n, l, _z=zero: _z)


def _vmem_limit_bytes(per_layer, head, S, D, C, mlp_dim):
    """Explicit scoped-VMEM budget: 2x (double-buffered) streamed layer block +
    resident head weights + I/O blocks + scratch + intermediate headroom."""
    layer_block = sum((a.size // a.shape[0]) * a.dtype.itemsize for a in per_layer)
    const = sum(a.size * a.dtype.itemsize for a in head)
    io_blocks = (S * D + C * S) * 4
    scratch = S * D * 4 + S * D * 2
    interm = 4 * (S * 3 * D + S * mlp_dim + S * S) * 4
    est = 2 * (layer_block + io_blocks) + const + scratch + interm + (8 << 20)
    return int(min(max(est, 32 << 20), 64 << 20))


# --------------------------------- wrapper ---------------------------------- #

def transformer_fft3d_forward(x_nds, params, *, heads, eps=1e-5):
    """x_nds: (N, dim, seq) -> logits (N, num_classes, seq), matching the module."""
    N, D, S = x_nds.shape
    assert D % heads == 0
    depth = len(params["layers"])
    C = params["head_w"].shape[0]
    mlp_dim = params["layers"][0]["w1"].shape[0]

    x_nsd = jnp.transpose(x_nds, (0, 2, 1)).astype(jnp.float32)  # module's permute(0,2,1)
    per_layer, head = _pack_params(params)

    kernel = functools.partial(_layer_kernel, heads=heads, eps=eps)
    in_specs = ([pl.BlockSpec((1, S, D), lambda n, l: (n, 0, 0))]
                + [_layer_spec(a) for a in per_layer]
                + [_const_spec(a) for a in head])

    out = pl.pallas_call(
        kernel,
        grid=(N, depth),
        out_shape=jax.ShapeDtypeStruct((N, C, S), jnp.float32),
        in_specs=in_specs,
        out_specs=pl.BlockSpec((1, C, S), lambda n, l: (n, 0, 0)),
        scratch_shapes=[pltpu.VMEM((S, D), jnp.float32),     # residual stream carry
                        pltpu.VMEM((S, D), jnp.bfloat16)],   # per-head ctx assembly
        compiler_params=pltpu.CompilerParams(
            dimension_semantics=("parallel", "arbitrary"),
            vmem_limit_bytes=_vmem_limit_bytes(per_layer, head, S, D, C, mlp_dim)),
    )(x_nsd, *per_layer, *head)
    return out


# ------------------------- pure-JAX reference check ------------------------- #
# The reference is module-faithful in structure (includes bk, exact-erf GELU,
# f32 LayerNorm/softmax) but mirrors the kernel's mixed-precision matmul policy
# (bf16 operands, f32 accumulation) so the check isolates implementation bugs
# from expected bf16 rounding.

def _mm(a, b):
    return jnp.dot(a.astype(jnp.bfloat16), b.astype(jnp.bfloat16),
                   preferred_element_type=jnp.float32)


def _layernorm_ref(x, w, b, eps):
    mu = x.mean(-1, keepdims=True)
    var = ((x - mu) ** 2).mean(-1, keepdims=True)
    return (x - mu) / jnp.sqrt(var + eps) * w + b


def _reference(x_nds, params, *, heads, eps=1e-5):
    x = jnp.transpose(x_nds, (0, 2, 1)).astype(jnp.float32)
    N, S, D = x.shape
    hd = D // heads
    for p in params["layers"]:
        xq = _layernorm_ref(x, p["ln1_w"], p["ln1_b"], eps)
        q = _mm(xq, p["wq"].T) + p["bq"]
        k = _mm(x, p["wk"].T) + p["bk"]
        v = _mm(x, p["wv"].T) + p["bv"]
        q = q.reshape(N, S, heads, hd).transpose(0, 2, 1, 3)
        k = k.reshape(N, S, heads, hd).transpose(0, 2, 1, 3)
        v = v.reshape(N, S, heads, hd).transpose(0, 2, 1, 3)
        s = jnp.einsum('nhqd,nhkd->nhqk', q.astype(jnp.bfloat16),
                       k.astype(jnp.bfloat16),
                       preferred_element_type=jnp.float32) / math.sqrt(float(hd))
        a = jax.nn.softmax(s, axis=-1)
        ctx = jnp.einsum('nhqk,nhkd->nhqd', a.astype(jnp.bfloat16),
                         v.astype(jnp.bfloat16),
                         preferred_element_type=jnp.float32)
        ctx = ctx.transpose(0, 2, 1, 3).reshape(N, S, D)
        x = x + _mm(ctx, p["wo"].T) + p["bo"]
        xn = _layernorm_ref(x, p["ln2_w"], p["ln2_b"], eps)
        h = jax.nn.gelu(_mm(xn, p["w1"].T) + p["b1"], approximate=False)
        x = x + _mm(h, p["w2"].T) + p["b2"]
    xn = _layernorm_ref(x, params["lnh_w"], params["lnh_b"], eps)
    logits = _mm(xn, params["head_w"].T) + params["head_b"]
    return jnp.transpose(logits, (0, 2, 1))


# ----------------------------------- main ------------------------------------ #

if __name__ == "__main__":
    num_classes, dim, depth, heads, mlp_dim = 8, 32, 2, 4, 64
    N, S = 2, 16

    key = jax.random.PRNGKey(0)
    kx, kp = jax.random.split(key)
    x = jax.random.normal(kx, (N, dim, S), jnp.float32)          # module input (N, dim, seq)
    params = init_params(kp, num_classes=num_classes, dim=dim, depth=depth,
                         heads=heads, mlp_dim=mlp_dim)

    fwd = jax.jit(functools.partial(transformer_fft3d_forward, heads=heads))
    y = fwd(x, params)
    jax.block_until_ready(y)
    assert y.shape == (N, num_classes, S)

    y_ref = _reference(x, params, heads=heads)
    err = float(jnp.max(jnp.abs(y - y_ref)))
    # Tolerance covers bf16 operand rounding, the approx-reciprocal softmax, the
    # erf polynomial, and the (mathematically inert) omission of bk in the kernel.
    assert err < 5e-2, f"mismatch vs reference: max abs err {err}"

    print("KERNEL_OK")
</pallas_src>

<mosaic_0001>
module attributes {stable_mosaic.version = 11 : i64} {
  func.func @_layer_kernel(%arg0: i32, %arg1: i32, %arg2: memref<1x16x32xf32, #tpu.memory_space<vmem>>, %arg3: memref<1x1x32xf32, #tpu.memory_space<vmem>>, %arg4: memref<1x1x32xf32, #tpu.memory_space<vmem>>, %arg5: memref<1x32x32xbf16, #tpu.memory_space<vmem>>, %arg6: memref<1x1x32xf32, #tpu.memory_space<vmem>>, %arg7: memref<1x32x64xbf16, #tpu.memory_space<vmem>>, %arg8: memref<1x1x32xf32, #tpu.memory_space<vmem>>, %arg9: memref<1x32x32xbf16, #tpu.memory_space<vmem>>, %arg10: memref<1x1x32xf32, #tpu.memory_space<vmem>>, %arg11: memref<1x1x32xf32, #tpu.memory_space<vmem>>, %arg12: memref<1x1x32xf32, #tpu.memory_space<vmem>>, %arg13: memref<1x32x64xbf16, #tpu.memory_space<vmem>>, %arg14: memref<1x1x64xf32, #tpu.memory_space<vmem>>, %arg15: memref<1x64x32xbf16, #tpu.memory_space<vmem>>, %arg16: memref<1x1x32xf32, #tpu.memory_space<vmem>>, %arg17: memref<1x32xf32, #tpu.memory_space<vmem>>, %arg18: memref<1x32xf32, #tpu.memory_space<vmem>>, %arg19: memref<8x32xbf16, #tpu.memory_space<vmem>>, %arg20: memref<8x1xf32, #tpu.memory_space<vmem>>, %arg21: memref<1x8x16xf32, #tpu.memory_space<vmem>>, %arg22: memref<16x32xf32, #tpu.memory_space<vmem>>, %arg23: memref<16x32xbf16, #tpu.memory_space<vmem>>) attributes {dimension_semantics = [#tpu.dimension_semantics<parallel>, #tpu.dimension_semantics<arbitrary>], iteration_bounds = array<i64: 2, 2>, scalar_prefetch = 0 : i64, scratch_operands = 2 : i64, tpu.core_type = #tpu.core_type<tc>, window_params = [{transform_indices = @transform_0, window_bounds = array<i64: 1, 16, 32>}, {transform_indices = @transform_1, window_bounds = array<i64: 1, 1, 32>}, {transform_indices = @transform_2, window_bounds = array<i64: 1, 1, 32>}, {transform_indices = @transform_3, window_bounds = array<i64: 1, 32, 32>}, {transform_indices = @transform_4, window_bounds = array<i64: 1, 1, 32>}, {transform_indices = @transform_5, window_bounds = array<i64: 1, 32, 64>}, {transform_indices = @transform_6, window_bounds = array<i64: 1, 1, 32>}, {transform_indices = @transform_7, window_bounds = array<i64: 1, 32, 32>}, {transform_indices = @transform_8, window_bounds = array<i64: 1, 1, 32>}, {transform_indices = @transform_9, window_bounds = array<i64: 1, 1, 32>}, {transform_indices = @transform_10, window_bounds = array<i64: 1, 1, 32>}, {transform_indices = @transform_11, window_bounds = array<i64: 1, 32, 64>}, {transform_indices = @transform_12, window_bounds = array<i64: 1, 1, 64>}, {transform_indices = @transform_13, window_bounds = array<i64: 1, 64, 32>}, {transform_indices = @transform_14, window_bounds = array<i64: 1, 1, 32>}, {pipeline_mode = #tpu.pipeline_mode<synchronous>, transform_indices = @transform_15, window_bounds = array<i64: 1, 32>}, {pipeline_mode = #tpu.pipeline_mode<synchronous>, transform_indices = @transform_16, window_bounds = array<i64: 1, 32>}, {pipeline_mode = #tpu.pipeline_mode<synchronous>, transform_indices = @transform_17, window_bounds = array<i64: 8, 32>}, {pipeline_mode = #tpu.pipeline_mode<synchronous>, transform_indices = @transform_18, window_bounds = array<i64: 8, 1>}, {transform_indices = @transform_19, window_bounds = array<i64: 1, 8, 16>}]} {
    %c0_i32 = arith.constant 0 : i32
    %0 = arith.cmpi eq, %arg1, %c0_i32 : i32
    %1 = arith.extui %0 : i1 to i32
    %c0_i32_0 = arith.constant 0 : i32
    %2 = arith.cmpi ne, %1, %c0_i32_0 : i32
    scf.if %2 {
      %c0_103 = arith.constant 0 : index
      %c0_104 = arith.constant 0 : index
      %c0_105 = arith.constant 0 : index
      %232 = vector.load %arg2[%c0_103, %c0_104, %c0_105] : memref<1x16x32xf32, #tpu.memory_space<vmem>>, vector<1x16x32xf32>
      %233 = vector.shape_cast %232 : vector<1x16x32xf32> to vector<16x32xf32>
      %c0_106 = arith.constant 0 : index
      %c0_107 = arith.constant 0 : index
      %234 = vector.load %arg22[%c0_106, %c0_107] : memref<16x32xf32, #tpu.memory_space<vmem>>, vector<16x32xf32>
      tpu.vector_store %arg22[%c0_106, %c0_107], %233 {strides = array<i32>} : memref<16x32xf32, #tpu.memory_space<vmem>>, vector<16x32xf32>,
    } else {
    }
    %c0 = arith.constant 0 : index
    %c0_1 = arith.constant 0 : index
    %3 = vector.load %arg22[%c0, %c0_1] : memref<16x32xf32, #tpu.memory_space<vmem>>, vector<16x32xf32>
    %c0_2 = arith.constant 0 : index
    %c0_3 = arith.constant 0 : index
    %c0_4 = arith.constant 0 : index
    %4 = vector.load %arg3[%c0_2, %c0_3, %c0_4] : memref<1x1x32xf32, #tpu.memory_space<vmem>>, vector<1x1x32xf32>
    %5 = vector.shape_cast %4 : vector<1x1x32xf32> to vector<1x32xf32>
    %c0_5 = arith.constant 0 : index
    %c0_6 = arith.constant 0 : index
    %c0_7 = arith.constant 0 : index
    %6 = vector.load %arg4[%c0_5, %c0_6, %c0_7] : memref<1x1x32xf32, #tpu.memory_space<vmem>>, vector<1x1x32xf32>
    %7 = vector.shape_cast %6 : vector<1x1x32xf32> to vector<1x32xf32>
    %cst = arith.constant dense<0.000000e+00> : vector<16xf32>
    %8 = vector.multi_reduction <add>, %3, %cst [1] : vector<16x32xf32> to vector<16xf32>
    %9 = vector.shape_cast %8 : vector<16xf32> to vector<16x1xf32>
    %cst_8 = arith.constant 3.200000e+01 : f32
    %10 = vector.broadcast %cst_8 : f32 to vector<16x1xf32>
    %11 = arith.divf %9, %10 : vector<16x1xf32>
    %12 = vector.broadcast %11 : vector<16x1xf32> to vector<16x32xf32>
    %13 = arith.subf %3, %12 : vector<16x32xf32>
    %14 = arith.mulf %13, %13 : vector<16x32xf32>
    %cst_9 = arith.constant dense<0.000000e+00> : vector<16xf32>
    %15 = vector.multi_reduction <add>, %14, %cst_9 [1] : vector<16x32xf32> to vector<16xf32>
    %16 = vector.shape_cast %15 : vector<16xf32> to vector<16x1xf32>
    %cst_10 = arith.constant 3.200000e+01 : f32
    %17 = vector.broadcast %cst_10 : f32 to vector<16x1xf32>
    %18 = arith.divf %16, %17 : vector<16x1xf32>
    %cst_11 = arith.constant 9.99999974E-6 : f32
    %19 = vector.broadcast %cst_11 : f32 to vector<16x1xf32>
    %20 = arith.addf %18, %19 : vector<16x1xf32>
    %21 = math.rsqrt %20 : vector<16x1xf32>
    %22 = vector.broadcast %21 : vector<16x1xf32> to vector<16x32xf32>
    %23 = arith.mulf %13, %22 : vector<16x32xf32>
    %24 = vector.broadcast %5 : vector<1x32xf32> to vector<16x32xf32>
    %25 = arith.mulf %23, %24 : vector<16x32xf32>
    %26 = vector.broadcast %7 : vector<1x32xf32> to vector<16x32xf32>
    %27 = arith.addf %25, %26 : vector<16x32xf32>
    %28 = arith.truncf %27 : vector<16x32xf32> to vector<16x32xbf16>
    %c0_12 = arith.constant 0 : index
    %c0_13 = arith.constant 0 : index
    %c0_14 = arith.constant 0 : index
    %29 = vector.load %arg5[%c0_12, %c0_13, %c0_14] : memref<1x32x32xbf16, #tpu.memory_space<vmem>>, vector<1x32x32xbf16>
    %30 = vector.shape_cast %29 : vector<1x32x32xbf16> to vector<32x32xbf16>
    %cst_15 = arith.constant dense<0.000000e+00> : vector<16x32xf32>
    %31 = tpu.matmul %28, %30, %cst_15 {dimension_numbers = #tpu.dot_dimension_numbers<[1], [0], [0], [1], [0, 0, 1, 1], [], []>} : vector<16x32xbf16>, vector<32x32xbf16>, vector<16x32xf32> -> vector<16x32xf32>
    %c0_16 = arith.constant 0 : index
    %c0_17 = arith.constant 0 : index
    %c0_18 = arith.constant 0 : index
    %32 = vector.load %arg6[%c0_16, %c0_17, %c0_18] : memref<1x1x32xf32, #tpu.memory_space<vmem>>, vector<1x1x32xf32>
    %33 = vector.shape_cast %32 : vector<1x1x32xf32> to vector<1x32xf32>
    %34 = vector.broadcast %33 : vector<1x32xf32> to vector<16x32xf32>
    %35 = arith.addf %31, %34 : vector<16x32xf32>
    %36 = arith.truncf %3 : vector<16x32xf32> to vector<16x32xbf16>
    %c0_19 = arith.constant 0 : index
    %c0_20 = arith.constant 0 : index
    %c0_21 = arith.constant 0 : index
    %37 = vector.load %arg7[%c0_19, %c0_20, %c0_21] : memref<1x32x64xbf16, #tpu.memory_space<vmem>>, vector<1x32x64xbf16>
    %38 = vector.shape_cast %37 : vector<1x32x64xbf16> to vector<32x64xbf16>
    %cst_22 = arith.constant dense<0.000000e+00> : vector<16x64xf32>
    %39 = tpu.matmul %36, %38, %cst_22 {dimension_numbers = #tpu.dot_dimension_numbers<[1], [0], [0], [1], [0, 0, 1, 1], [], []>} : vector<16x32xbf16>, vector<32x64xbf16>, vector<16x64xf32> -> vector<16x64xf32>
    %40 = vector.extract_strided_slice %39 {offsets = [0, 0], sizes = [16, 32], strides = [1, 1]} : vector<16x64xf32> to vector<16x32xf32>
    %41 = vector.extract_strided_slice %39 {offsets = [0, 32], sizes = [16, 32], strides = [1, 1]} : vector<16x64xf32> to vector<16x32xf32>
    %c0_23 = arith.constant 0 : index
    %c0_24 = arith.constant 0 : index
    %c0_25 = arith.constant 0 : index
    %42 = vector.load %arg8[%c0_23, %c0_24, %c0_25] : memref<1x1x32xf32, #tpu.memory_space<vmem>>, vector<1x1x32xf32>
    %43 = vector.shape_cast %42 : vector<1x1x32xf32> to vector<1x32xf32>
    %44 = vector.broadcast %43 : vector<1x32xf32> to vector<16x32xf32>
    %45 = arith.addf %41, %44 : vector<16x32xf32>
    %46 = vector.extract_strided_slice %35 {offsets = [0, 0], sizes = [16, 8], strides = [1, 1]} : vector<16x32xf32> to vector<16x8xf32>
    %47 = arith.truncf %46 : vector<16x8xf32> to vector<16x8xbf16>
    %48 = vector.extract_strided_slice %40 {offsets = [0, 0], sizes = [16, 8], strides = [1, 1]} : vector<16x32xf32> to vector<16x8xf32>
    %49 = arith.truncf %48 : vector<16x8xf32> to vector<16x8xbf16>
    %50 = vector.extract_strided_slice %45 {offsets = [0, 0], sizes = [16, 8], strides = [1, 1]} : vector<16x32xf32> to vector<16x8xf32>
    %51 = arith.truncf %50 : vector<16x8xf32> to vector<16x8xbf16>
    "tpu.trace_start"() <{level = 10 : i32, message = "qd,kd->qk"}> : () -> ()
    %cst_26 = arith.constant dense<0.000000e+00> : vector<16x16xf32>
    %52 = tpu.matmul %47, %49, %cst_26 {dimension_numbers = #tpu.dot_dimension_numbers<[1], [1], [0], [0], [0, 0, 1, 0], [], []>} : vector<16x8xbf16>, vector<16x8xbf16>, vector<16x16xf32> -> vector<16x16xf32>
    "tpu.trace_stop"() : () -> ()
    %cst_27 = arith.constant 0.353553385 : f32
    %53 = vector.broadcast %cst_27 : f32 to vector<16x16xf32>
    %54 = arith.mulf %52, %53 : vector<16x16xf32>
    %cst_28 = arith.constant dense<0xFF800000> : vector<16xf32>
    %55 = vector.multi_reduction <maximumf>, %54, %cst_28 [1] : vector<16x16xf32> to vector<16xf32>
    %56 = vector.shape_cast %55 : vector<16xf32> to vector<16x1xf32>
    %57 = vector.broadcast %56 : vector<16x1xf32> to vector<16x16xf32>
    %58 = arith.subf %54, %57 : vector<16x16xf32>
    %59 = math.exp %58 : vector<16x16xf32>
    %cst_29 = arith.constant dense<0.000000e+00> : vector<16xf32>
    %60 = vector.multi_reduction <add>, %59, %cst_29 [1] : vector<16x16xf32> to vector<16xf32>
    %61 = vector.shape_cast %60 : vector<16xf32> to vector<16x1xf32>
    %62 = tpu.reciprocal %61 {approx = true} : vector<16x1xf32> -> vector<16x1xf32>
    %63 = vector.broadcast %62 : vector<16x1xf32> to vector<16x16xf32>
    %64 = arith.mulf %59, %63 : vector<16x16xf32>
    %65 = arith.truncf %64 : vector<16x16xf32> to vector<16x16xbf16>
    %cst_30 = arith.constant dense<0.000000e+00> : vector<16x8xf32>
    %66 = tpu.matmul %65, %51, %cst_30 {dimension_numbers = #tpu.dot_dimension_numbers<[1], [0], [0], [1], [0, 0, 1, 1], [], []>} : vector<16x16xbf16>, vector<16x8xbf16>, vector<16x8xf32> -> vector<16x8xf32>
    %67 = arith.truncf %66 : vector<16x8xf32> to vector<16x8xbf16>
    %c0_31 = arith.constant 0 : index
    %c0_32 = arith.constant 0 : index
    %68 = vector.load %arg23[%c0_31, %c0_32] : memref<16x32xbf16, #tpu.memory_space<vmem>>, vector<16x8xbf16>
    tpu.vector_store %arg23[%c0_31, %c0_32], %67 {strides = array<i32>} : memref<16x32xbf16, #tpu.memory_space<vmem>>, vector<16x8xbf16>,
    %69 = vector.extract_strided_slice %35 {offsets = [0, 8], sizes = [16, 8], strides = [1, 1]} : vector<16x32xf32> to vector<16x8xf32>
    %70 = arith.truncf %69 : vector<16x8xf32> to vector<16x8xbf16>
    %71 = vector.extract_strided_slice %40 {offsets = [0, 8], sizes = [16, 8], strides = [1, 1]} : vector<16x32xf32> to vector<16x8xf32>
    %72 = arith.truncf %71 : vector<16x8xf32> to vector<16x8xbf16>
    %73 = vector.extract_strided_slice %45 {offsets = [0, 8], sizes = [16, 8], strides = [1, 1]} : vector<16x32xf32> to vector<16x8xf32>
    %74 = arith.truncf %73 : vector<16x8xf32> to vector<16x8xbf16>
    "tpu.trace_start"() <{level = 10 : i32, message = "qd,kd->qk"}> : () -> ()
    %cst_33 = arith.constant dense<0.000000e+00> : vector<16x16xf32>
    %75 = tpu.matmul %70, %72, %cst_33 {dimension_numbers = #tpu.dot_dimension_numbers<[1], [1], [0], [0], [0, 0, 1, 0], [], []>} : vector<16x8xbf16>, vector<16x8xbf16>, vector<16x16xf32> -> vector<16x16xf32>
    "tpu.trace_stop"() : () -> ()
    %cst_34 = arith.constant 0.353553385 : f32
    %76 = vector.broadcast %cst_34 : f32 to vector<16x16xf32>
    %77 = arith.mulf %75, %76 : vector<16x16xf32>
    %cst_35 = arith.constant dense<0xFF800000> : vector<16xf32>
    %78 = vector.multi_reduction <maximumf>, %77, %cst_35 [1] : vector<16x16xf32> to vector<16xf32>
    %79 = vector.shape_cast %78 : vector<16xf32> to vector<16x1xf32>
    %80 = vector.broadcast %79 : vector<16x1xf32> to vector<16x16xf32>
    %81 = arith.subf %77, %80 : vector<16x16xf32>
    %82 = math.exp %81 : vector<16x16xf32>
    %cst_36 = arith.constant dense<0.000000e+00> : vector<16xf32>
    %83 = vector.multi_reduction <add>, %82, %cst_36 [1] : vector<16x16xf32> to vector<16xf32>
    %84 = vector.shape_cast %83 : vector<16xf32> to vector<16x1xf32>
    %85 = tpu.reciprocal %84 {approx = true} : vector<16x1xf32> -> vector<16x1xf32>
    %86 = vector.broadcast %85 : vector<16x1xf32> to vector<16x16xf32>
    %87 = arith.mulf %82, %86 : vector<16x16xf32>
    %88 = arith.truncf %87 : vector<16x16xf32> to vector<16x16xbf16>
    %cst_37 = arith.constant dense<0.000000e+00> : vector<16x8xf32>
    %89 = tpu.matmul %88, %74, %cst_37 {dimension_numbers = #tpu.dot_dimension_numbers<[1], [0], [0], [1], [0, 0, 1, 1], [], []>} : vector<16x16xbf16>, vector<16x8xbf16>, vector<16x8xf32> -> vector<16x8xf32>
    %90 = arith.truncf %89 : vector<16x8xf32> to vector<16x8xbf16>
    %c0_38 = arith.constant 0 : index
    %c8 = arith.constant 8 : index
    %91 = vector.load %arg23[%c0_38, %c8] : memref<16x32xbf16, #tpu.memory_space<vmem>>, vector<16x8xbf16>
    tpu.vector_store %arg23[%c0_38, %c8], %90 {strides = array<i32>} : memref<16x32xbf16, #tpu.memory_space<vmem>>, vector<16x8xbf16>,
    %92 = vector.extract_strided_slice %35 {offsets = [0, 16], sizes = [16, 8], strides = [1, 1]} : vector<16x32xf32> to vector<16x8xf32>
    %93 = arith.truncf %92 : vector<16x8xf32> to vector<16x8xbf16>
    %94 = vector.extract_strided_slice %40 {offsets = [0, 16], sizes = [16, 8], strides = [1, 1]} : vector<16x32xf32> to vector<16x8xf32>
    %95 = arith.truncf %94 : vector<16x8xf32> to vector<16x8xbf16>
    %96 = vector.extract_strided_slice %45 {offsets = [0, 16], sizes = [16, 8], strides = [1, 1]} : vector<16x32xf32> to vector<16x8xf32>
    %97 = arith.truncf %96 : vector<16x8xf32> to vector<16x8xbf16>
    "tpu.trace_start"() <{level = 10 : i32, message = "qd,kd->qk"}> : () -> ()
    %cst_39 = arith.constant dense<0.000000e+00> : vector<16x16xf32>
    %98 = tpu.matmul %93, %95, %cst_39 {dimension_numbers = #tpu.dot_dimension_numbers<[1], [1], [0], [0], [0, 0, 1, 0], [], []>} : vector<16x8xbf16>, vector<16x8xbf16>, vector<16x16xf32> -> vector<16x16xf32>
    "tpu.trace_stop"() : () -> ()
    %cst_40 = arith.constant 0.353553385 : f32
    %99 = vector.broadcast %cst_40 : f32 to vector<16x16xf32>
    %100 = arith.mulf %98, %99 : vector<16x16xf32>
    %cst_41 = arith.constant dense<0xFF800000> : vector<16xf32>
    %101 = vector.multi_reduction <maximumf>, %100, %cst_41 [1] : vector<16x16xf32> to vector<16xf32>
    %102 = vector.shape_cast %101 : vector<16xf32> to vector<16x1xf32>
    %103 = vector.broadcast %102 : vector<16x1xf32> to vector<16x16xf32>
    %104 = arith.subf %100, %103 : vector<16x16xf32>
    %105 = math.exp %104 : vector<16x16xf32>
    %cst_42 = arith.constant dense<0.000000e+00> : vector<16xf32>
    %106 = vector.multi_reduction <add>, %105, %cst_42 [1] : vector<16x16xf32> to vector<16xf32>
    %107 = vector.shape_cast %106 : vector<16xf32> to vector<16x1xf32>
    %108 = tpu.reciprocal %107 {approx = true} : vector<16x1xf32> -> vector<16x1xf32>
    %109 = vector.broadcast %108 : vector<16x1xf32> to vector<16x16xf32>
    %110 = arith.mulf %105, %109 : vector<16x16xf32>
    %111 = arith.truncf %110 : vector<16x16xf32> to vector<16x16xbf16>
    %cst_43 = arith.constant dense<0.000000e+00> : vector<16x8xf32>
    %112 = tpu.matmul %111, %97, %cst_43 {dimension_numbers = #tpu.dot_dimension_numbers<[1], [0], [0], [1], [0, 0, 1, 1], [], []>} : vector<16x16xbf16>, vector<16x8xbf16>, vector<16x8xf32> -> vector<16x8xf32>
    %113 = arith.truncf %112 : vector<16x8xf32> to vector<16x8xbf16>
    %c0_44 = arith.constant 0 : index
    %c16 = arith.constant 16 : index
    %114 = vector.load %arg23[%c0_44, %c16] : memref<16x32xbf16, #tpu.memory_space<vmem>>, vector<16x8xbf16>
    tpu.vector_store %arg23[%c0_44, %c16], %113 {strides = array<i32>} : memref<16x32xbf16, #tpu.memory_space<vmem>>, vector<16x8xbf16>,
    %115 = vector.extract_strided_slice %35 {offsets = [0, 24], sizes = [16, 8], strides = [1, 1]} : vector<16x32xf32> to vector<16x8xf32>
    %116 = arith.truncf %115 : vector<16x8xf32> to vector<16x8xbf16>
    %117 = vector.extract_strided_slice %40 {offsets = [0, 24], sizes = [16, 8], strides = [1, 1]} : vector<16x32xf32> to vector<16x8xf32>
    %118 = arith.truncf %117 : vector<16x8xf32> to vector<16x8xbf16>
    %119 = vector.extract_strided_slice %45 {offsets = [0, 24], sizes = [16, 8], strides = [1, 1]} : vector<16x32xf32> to vector<16x8xf32>
    %120 = arith.truncf %119 : vector<16x8xf32> to vector<16x8xbf16>
    "tpu.trace_start"() <{level = 10 : i32, message = "qd,kd->qk"}> : () -> ()
    %cst_45 = arith.constant dense<0.000000e+00> : vector<16x16xf32>
    %121 = tpu.matmul %116, %118, %cst_45 {dimension_numbers = #tpu.dot_dimension_numbers<[1], [1], [0], [0], [0, 0, 1, 0], [], []>} : vector<16x8xbf16>, vector<16x8xbf16>, vector<16x16xf32> -> vector<16x16xf32>
    "tpu.trace_stop"() : () -> ()
    %cst_46 = arith.constant 0.353553385 : f32
    %122 = vector.broadcast %cst_46 : f32 to vector<16x16xf32>
    %123 = arith.mulf %121, %122 : vector<16x16xf32>
    %cst_47 = arith.constant dense<0xFF800000> : vector<16xf32>
    %124 = vector.multi_reduction <maximumf>, %123, %cst_47 [1] : vector<16x16xf32> to vector<16xf32>
    %125 = vector.shape_cast %124 : vector<16xf32> to vector<16x1xf32>
    %126 = vector.broadcast %125 : vector<16x1xf32> to vector<16x16xf32>
    %127 = arith.subf %123, %126 : vector<16x16xf32>
    %128 = math.exp %127 : vector<16x16xf32>
    %cst_48 = arith.constant dense<0.000000e+00> : vector<16xf32>
    %129 = vector.multi_reduction <add>, %128, %cst_48 [1] : vector<16x16xf32> to vector<16xf32>
    %130 = vector.shape_cast %129 : vector<16xf32> to vector<16x1xf32>
    %131 = tpu.reciprocal %130 {approx = true} : vector<16x1xf32> -> vector<16x1xf32>
    %132 = vector.broadcast %131 : vector<16x1xf32> to vector<16x16xf32>
    %133 = arith.mulf %128, %132 : vector<16x16xf32>
    %134 = arith.truncf %133 : vector<16x16xf32> to vector<16x16xbf16>
    %cst_49 = arith.constant dense<0.000000e+00> : vector<16x8xf32>
    %135 = tpu.matmul %134, %120, %cst_49 {dimension_numbers = #tpu.dot_dimension_numbers<[1], [0], [0], [1], [0, 0, 1, 1], [], []>} : vector<16x16xbf16>, vector<16x8xbf16>, vector<16x8xf32> -> vector<16x8xf32>
    %136 = arith.truncf %135 : vector<16x8xf32> to vector<16x8xbf16>
    %c0_50 = arith.constant 0 : index
    %c24 = arith.constant 24 : index
    %137 = vector.load %arg23[%c0_50, %c24] : memref<16x32xbf16, #tpu.memory_space<vmem>>, vector<16x8xbf16>
    tpu.vector_store %arg23[%c0_50, %c24], %136 {strides = array<i32>} : memref<16x32xbf16, #tpu.memory_space<vmem>>, vector<16x8xbf16>,
    %c0_51 = arith.constant 0 : index
    %c0_52 = arith.constant 0 : index
    %138 = vector.load %arg23[%c0_51, %c0_52] : memref<16x32xbf16, #tpu.memory_space<vmem>>, vector<16x32xbf16>
    %c0_53 = arith.constant 0 : index
    %c0_54 = arith.constant 0 : index
    %c0_55 = arith.constant 0 : index
    %139 = vector.load %arg9[%c0_53, %c0_54, %c0_55] : memref<1x32x32xbf16, #tpu.memory_space<vmem>>, vector<1x32x32xbf16>
    %140 = vector.shape_cast %139 : vector<1x32x32xbf16> to vector<32x32xbf16>
    %cst_56 = arith.constant dense<0.000000e+00> : vector<16x32xf32>
    %141 = tpu.matmul %138, %140, %cst_56 {dimension_numbers = #tpu.dot_dimension_numbers<[1], [0], [0], [1], [0, 0, 1, 1], [], []>} : vector<16x32xbf16>, vector<32x32xbf16>, vector<16x32xf32> -> vector<16x32xf32>
    %c0_57 = arith.constant 0 : index
    %c0_58 = arith.constant 0 : index
    %c0_59 = arith.constant 0 : index
    %142 = vector.load %arg10[%c0_57, %c0_58, %c0_59] : memref<1x1x32xf32, #tpu.memory_space<vmem>>, vector<1x1x32xf32>
    %143 = vector.shape_cast %142 : vector<1x1x32xf32> to vector<1x32xf32>
    %144 = vector.broadcast %143 : vector<1x32xf32> to vector<16x32xf32>
    %145 = arith.addf %141, %144 : vector<16x32xf32>
    %146 = arith.addf %3, %145 : vector<16x32xf32>
    %c0_60 = arith.constant 0 : index
    %c0_61 = arith.constant 0 : index
    %c0_62 = arith.constant 0 : index
    %147 = vector.load %arg11[%c0_60, %c0_61, %c0_62] : memref<1x1x32xf32, #tpu.memory_space<vmem>>, vector<1x1x32xf32>
    %148 = vector.shape_cast %147 : vector<1x1x32xf32> to vector<1x32xf32>
    %c0_63 = arith.constant 0 : index
    %c0_64 = arith.constant 0 : index
    %c0_65 = arith.constant 0 : index
    %149 = vector.load %arg12[%c0_63, %c0_64, %c0_65] : memref<1x1x32xf32, #tpu.memory_space<vmem>>, vector<1x1x32xf32>
    %150 = vector.shape_cast %149 : vector<1x1x32xf32> to vector<1x32xf32>
    %cst_66 = arith.constant dense<0.000000e+00> : vector<16xf32>
    %151 = vector.multi_reduction <add>, %146, %cst_66 [1] : vector<16x32xf32> to vector<16xf32>
    %152 = vector.shape_cast %151 : vector<16xf32> to vector<16x1xf32>
    %cst_67 = arith.constant 3.200000e+01 : f32
    %153 = vector.broadcast %cst_67 : f32 to vector<16x1xf32>
    %154 = arith.divf %152, %153 : vector<16x1xf32>
    %155 = vector.broadcast %154 : vector<16x1xf32> to vector<16x32xf32>
    %156 = arith.subf %146, %155 : vector<16x32xf32>
    %157 = arith.mulf %156, %156 : vector<16x32xf32>
    %cst_68 = arith.constant dense<0.000000e+00> : vector<16xf32>
    %158 = vector.multi_reduction <add>, %157, %cst_68 [1] : vector<16x32xf32> to vector<16xf32>
    %159 = vector.shape_cast %158 : vector<16xf32> to vector<16x1xf32>
    %cst_69 = arith.constant 3.200000e+01 : f32
    %160 = vector.broadcast %cst_69 : f32 to vector<16x1xf32>
    %161 = arith.divf %159, %160 : vector<16x1xf32>
    %cst_70 = arith.constant 9.99999974E-6 : f32
    %162 = vector.broadcast %cst_70 : f32 to vector<16x1xf32>
    %163 = arith.addf %161, %162 : vector<16x1xf32>
    %164 = math.rsqrt %163 : vector<16x1xf32>
    %165 = vector.broadcast %164 : vector<16x1xf32> to vector<16x32xf32>
    %166 = arith.mulf %156, %165 : vector<16x32xf32>
    %167 = vector.broadcast %148 : vector<1x32xf32> to vector<16x32xf32>
    %168 = arith.mulf %166, %167 : vector<16x32xf32>
    %169 = vector.broadcast %150 : vector<1x32xf32> to vector<16x32xf32>
    %170 = arith.addf %168, %169 : vector<16x32xf32>
    %171 = arith.truncf %170 : vector<16x32xf32> to vector<16x32xbf16>
    %c0_71 = arith.constant 0 : index
    %c0_72 = arith.constant 0 : index
    %c0_73 = arith.constant 0 : index
    %172 = vector.load %arg13[%c0_71, %c0_72, %c0_73] : memref<1x32x64xbf16, #tpu.memory_space<vmem>>, vector<1x32x64xbf16>
    %173 = vector.shape_cast %172 : vector<1x32x64xbf16> to vector<32x64xbf16>
    %cst_74 = arith.constant dense<0.000000e+00> : vector<16x64xf32>
    %174 = tpu.matmul %171, %173, %cst_74 {dimension_numbers = #tpu.dot_dimension_numbers<[1], [0], [0], [1], [0, 0, 1, 1], [], []>} : vector<16x32xbf16>, vector<32x64xbf16>, vector<16x64xf32> -> vector<16x64xf32>
    %c0_75 = arith.constant 0 : index
    %c0_76 = arith.constant 0 : index
    %c0_77 = arith.constant 0 : index
    %175 = vector.load %arg14[%c0_75, %c0_76, %c0_77] : memref<1x1x64xf32, #tpu.memory_space<vmem>>, vector<1x1x64xf32>
    %176 = vector.shape_cast %175 : vector<1x1x64xf32> to vector<1x64xf32>
    %177 = vector.broadcast %176 : vector<1x64xf32> to vector<16x64xf32>
    %178 = arith.addf %174, %177 : vector<16x64xf32>
    %cst_78 = arith.constant 5.000000e-01 : f32
    %179 = vector.broadcast %cst_78 : f32 to vector<16x64xf32>
    %180 = arith.mulf %179, %178 : vector<16x64xf32>
    %cst_79 = arith.constant 0.707106769 : f32
    %181 = vector.broadcast %cst_79 : f32 to vector<16x64xf32>
    %182 = arith.mulf %178, %181 : vector<16x64xf32>
    %183 = math.absf %182 : vector<16x64xf32>
    %cst_80 = arith.constant 0.327591091 : f32
    %184 = vector.broadcast %cst_80 : f32 to vector<16x64xf32>
    %185 = arith.mulf %184, %183 : vector<16x64xf32>
    %cst_81 = arith.constant 1.000000e+00 : f32
    %186 = vector.broadcast %cst_81 : f32 to vector<16x64xf32>
    %187 = arith.addf %186, %185 : vector<16x64xf32>
    %cst_82 = arith.constant 1.000000e+00 : f32
    %188 = vector.broadcast %cst_82 : f32 to vector<16x64xf32>
    %189 = arith.divf %188, %187 : vector<16x64xf32>
    %cst_83 = arith.constant 1.06140542 : f32
    %190 = vector.broadcast %cst_83 : f32 to vector<16x64xf32>
    %191 = arith.mulf %190, %189 : vector<16x64xf32>
    %cst_84 = arith.constant -1.45315206 : f32
    %192 = vector.broadcast %cst_84 : f32 to vector<16x64xf32>
    %193 = arith.addf %191, %192 : vector<16x64xf32>
    %194 = arith.mulf %193, %189 : vector<16x64xf32>
    %cst_85 = arith.constant 1.42141378 : f32
    %195 = vector.broadcast %cst_85 : f32 to vector<16x64xf32>
    %196 = arith.addf %194, %195 : vector<16x64xf32>
    %197 = arith.mulf %196, %189 : vector<16x64xf32>
    %cst_86 = arith.constant -0.284496725 : f32
    %198 = vector.broadcast %cst_86 : f32 to vector<16x64xf32>
    %199 = arith.addf %197, %198 : vector<16x64xf32>
    %200 = arith.mulf %199, %189 : vector<16x64xf32>
    %cst_87 = arith.constant 0.254829586 : f32
    %201 = vector.broadcast %cst_87 : f32 to vector<16x64xf32>
    %202 = arith.addf %200, %201 : vector<16x64xf32>
    %203 = arith.mulf %202, %189 : vector<16x64xf32>
    %cst_88 = arith.constant 0.000000e+00 : f32
    %204 = vector.broadcast %cst_88 : f32 to vector<16x64xf32>
    %205 = arith.subf %204, %183 : vector<16x64xf32>
    %206 = arith.mulf %205, %183 : vector<16x64xf32>
    %207 = math.exp %206 : vector<16x64xf32>
    %208 = arith.mulf %203, %207 : vector<16x64xf32>
    %cst_89 = arith.constant 1.000000e+00 : f32
    %209 = vector.broadcast %cst_89 : f32 to vector<16x64xf32>
    %210 = arith.subf %209, %208 : vector<16x64xf32>
    %cst_90 = arith.constant 0.000000e+00 : f32
    %211 = vector.broadcast %cst_90 : f32 to vector<16x64xf32>
    %212 = arith.cmpf olt, %182, %211 : vector<16x64xf32>
    %cst_91 = arith.constant 0.000000e+00 : f32
    %213 = vector.broadcast %cst_91 : f32 to vector<16x64xf32>
    %214 = arith.subf %213, %210 : vector<16x64xf32>
    %215 = arith.select %212, %214, %210 : vector<16x64xi1>, vector<16x64xf32>
    %cst_92 = arith.constant 1.000000e+00 : f32
    %216 = vector.broadcast %cst_92 : f32 to vector<16x64xf32>
    %217 = arith.addf %216, %215 : vector<16x64xf32>
    %218 = arith.mulf %180, %217 : vector<16x64xf32>
    %219 = arith.truncf %218 : vector<16x64xf32> to vector<16x64xbf16>
    %c0_93 = arith.constant 0 : index
    %c0_94 = arith.constant 0 : index
    %c0_95 = arith.constant 0 : index
    %220 = vector.load %arg15[%c0_93, %c0_94, %c0_95] : memref<1x64x32xbf16, #tpu.memory_space<vmem>>, vector<1x64x32xbf16>
    %221 = vector.shape_cast %220 : vector<1x64x32xbf16> to vector<64x32xbf16>
    %cst_96 = arith.constant dense<0.000000e+00> : vector<16x32xf32>
    %222 = tpu.matmul %219, %221, %cst_96 {dimension_numbers = #tpu.dot_dimension_numbers<[1], [0], [0], [1], [0, 0, 1, 1], [], []>} : vector<16x64xbf16>, vector<64x32xbf16>, vector<16x32xf32> -> vector<16x32xf32>
    %223 = arith.addf %146, %222 : vector<16x32xf32>
    %c0_97 = arith.constant 0 : index
    %c0_98 = arith.constant 0 : index
    %c0_99 = arith.constant 0 : index
    %224 = vector.load %arg16[%c0_97, %c0_98, %c0_99] : memref<1x1x32xf32, #tpu.memory_space<vmem>>, vector<1x1x32xf32>
    %225 = vector.shape_cast %224 : vector<1x1x32xf32> to vector<1x32xf32>
    %226 = vector.broadcast %225 : vector<1x32xf32> to vector<16x32xf32>
    %227 = arith.addf %223, %226 : vector<16x32xf32>
    %c0_100 = arith.constant 0 : index
    %c0_101 = arith.constant 0 : index
    %228 = vector.load %arg22[%c0_100, %c0_101] : memref<16x32xf32, #tpu.memory_space<vmem>>, vector<16x32xf32>
    tpu.vector_store %arg22[%c0_100, %c0_101], %227 {strides = array<i32>} : memref<16x32xf32, #tpu.memory_space<vmem>>, vector<16x32xf32>,
    %c1_i32 = arith.constant 1 : i32
    %229 = arith.cmpi eq, %arg1, %c1_i32 : i32
    %230 = arith.extui %229 : i1 to i32
    %c0_i32_102 = arith.constant 0 : i32
    %231 = arith.cmpi ne, %230, %c0_i32_102 : i32
    scf.if %231 {
      %c0_103 = arith.constant 0 : index
      %c0_104 = arith.constant 0 : index
      %232 = vector.load %arg17[%c0_103, %c0_104] : memref<1x32xf32, #tpu.memory_space<vmem>>, vector<1x32xf32>
      %c0_105 = arith.constant 0 : index
      %c0_106 = arith.constant 0 : index
      %233 = vector.load %arg18[%c0_105, %c0_106] : memref<1x32xf32, #tpu.memory_space<vmem>>, vector<1x32xf32>
      %cst_107 = arith.constant dense<0.000000e+00> : vector<16xf32>
      %234 = vector.multi_reduction <add>, %227, %cst_107 [1] : vector<16x32xf32> to vector<16xf32>
      %235 = vector.shape_cast %234 : vector<16xf32> to vector<16x1xf32>
      %cst_108 = arith.constant 3.200000e+01 : f32
      %236 = vector.broadcast %cst_108 : f32 to vector<16x1xf32>
      %237 = arith.divf %235, %236 : vector<16x1xf32>
      %238 = vector.broadcast %237 : vector<16x1xf32> to vector<16x32xf32>
      %239 = arith.subf %227, %238 : vector<16x32xf32>
      %240 = arith.mulf %239, %239 : vector<16x32xf32>
      %cst_109 = arith.constant dense<0.000000e+00> : vector<16xf32>
      %241 = vector.multi_reduction <add>, %240, %cst_109 [1] : vector<16x32xf32> to vector<16xf32>
      %242 = vector.shape_cast %241 : vector<16xf32> to vector<16x1xf32>
      %cst_110 = arith.constant 3.200000e+01 : f32
      %243 = vector.broadcast %cst_110 : f32 to vector<16x1xf32>
      %244 = arith.divf %242, %243 : vector<16x1xf32>
      %cst_111 = arith.constant 9.99999974E-6 : f32
      %245 = vector.broadcast %cst_111 : f32 to vector<16x1xf32>
      %246 = arith.addf %244, %245 : vector<16x1xf32>
      %247 = math.rsqrt %246 : vector<16x1xf32>
      %248 = vector.broadcast %247 : vector<16x1xf32> to vector<16x32xf32>
      %249 = arith.mulf %239, %248 : vector<16x32xf32>
      %250 = vector.broadcast %232 : vector<1x32xf32> to vector<16x32xf32>
      %251 = arith.mulf %249, %250 : vector<16x32xf32>
      %252 = vector.broadcast %233 : vector<1x32xf32> to vector<16x32xf32>
      %253 = arith.addf %251, %252 : vector<16x32xf32>
      %c0_112 = arith.constant 0 : index
      %c0_113 = arith.constant 0 : index
      %254 = vector.load %arg19[%c0_112, %c0_113] : memref<8x32xbf16, #tpu.memory_space<vmem>>, vector<8x32xbf16>
      %255 = arith.truncf %253 : vector<16x32xf32> to vector<16x32xbf16>
      "tpu.trace_start"() <{level = 10 : i32, message = "cd,sd->cs"}> : () -> ()
      %cst_114 = arith.constant dense<0.000000e+00> : vector<8x16xf32>
      %256 = tpu.matmul %254, %255, %cst_114 {dimension_numbers = #tpu.dot_dimension_numbers<[1], [1], [0], [0], [0, 0, 1, 0], [], []>} : vector<8x32xbf16>, vector<16x32xbf16>, vector<8x16xf32> -> vector<8x16xf32>
      "tpu.trace_stop"() : () -> ()
      %c0_115 = arith.constant 0 : index
      %c0_116 = arith.constant 0 : index
      %257 = vector.load %arg20[%c0_115, %c0_116] : memref<8x1xf32, #tpu.memory_space<vmem>>, vector<8x1xf32>
      %258 = vector.broadcast %257 : vector<8x1xf32> to vector<8x16xf32>
      %259 = arith.addf %256, %258 : vector<8x16xf32>
      %c0_117 = arith.constant 0 : index
      %c0_118 = arith.constant 0 : index
      %c0_119 = arith.constant 0 : index
      %260 = vector.load %arg21[%c0_117, %c0_118, %c0_119] : memref<1x8x16xf32, #tpu.memory_space<vmem>>, vector<1x8x16xf32>
      %261 = vector.shape_cast %260 : vector<1x8x16xf32> to vector<8x16xf32>
      %262 = vector.shape_cast %259 : vector<8x16xf32> to vector<1x8x16xf32>
      tpu.vector_store %arg21[%c0_117, %c0_118, %c0_119], %262 {strides = array<i32>} : memref<1x8x16xf32, #tpu.memory_space<vmem>>, vector<1x8x16xf32>,
    } else {
    }
    return
  }
  func.func @transform_0(%arg0: i32, %arg1: i32) -> (i32, i32, i32) {
    %c0_i32 = arith.constant 0 : i32
    %c0_i32_0 = arith.constant 0 : i32
    %c0_i32_1 = arith.constant 0 : i32
    return %arg0, %c0_i32, %c0_i32_0 : i32, i32, i32
  }
  func.func @transform_1(%arg0: i32, %arg1: i32) -> (i32, i32, i32) {
    %c0_i32 = arith.constant 0 : i32
    %c0_i32_0 = arith.constant 0 : i32
    %c0_i32_1 = arith.constant 0 : i32
    return %arg1, %c0_i32, %c0_i32_0 : i32, i32, i32
  }
  func.func @transform_2(%arg0: i32, %arg1: i32) -> (i32, i32, i32) {
    %c0_i32 = arith.constant 0 : i32
    %c0_i32_0 = arith.constant 0 : i32
    %c0_i32_1 = arith.constant 0 : i32
    return %arg1, %c0_i32, %c0_i32_0 : i32, i32, i32
  }
  func.func @transform_3(%arg0: i32, %arg1: i32) -> (i32, i32, i32) {
    %c0_i32 = arith.constant 0 : i32
    %c0_i32_0 = arith.constant 0 : i32
    %c0_i32_1 = arith.constant 0 : i32
    return %arg1, %c0_i32, %c0_i32_0 : i32, i32, i32
  }
  func.func @transform_4(%arg0: i32, %arg1: i32) -> (i32, i32, i32) {
    %c0_i32 = arith.constant 0 : i32
    %c0_i32_0 = arith.constant 0 : i32
    %c0_i32_1 = arith.constant 0 : i32
    return %arg1, %c0_i32, %c0_i32_0 : i32, i32, i32
  }
  func.func @transform_5(%arg0: i32, %arg1: i32) -> (i32, i32, i32) {
    %c0_i32 = arith.constant 0 : i32
    %c0_i32_0 = arith.constant 0 : i32
    %c0_i32_1 = arith.constant 0 : i32
    return %arg1, %c0_i32, %c0_i32_0 : i32, i32, i32
  }
  func.func @transform_6(%arg0: i32, %arg1: i32) -> (i32, i32, i32) {
    %c0_i32 = arith.constant 0 : i32
    %c0_i32_0 = arith.constant 0 : i32
    %c0_i32_1 = arith.constant 0 : i32
    return %arg1, %c0_i32, %c0_i32_0 : i32, i32, i32
  }
  func.func @transform_7(%arg0: i32, %arg1: i32) -> (i32, i32, i32) {
    %c0_i32 = arith.constant 0 : i32
    %c0_i32_0 = arith.constant 0 : i32
    %c0_i32_1 = arith.constant 0 : i32
    return %arg1, %c0_i32, %c0_i32_0 : i32, i32, i32
  }
  func.func @transform_8(%arg0: i32, %arg1: i32) -> (i32, i32, i32) {
    %c0_i32 = arith.constant 0 : i32
    %c0_i32_0 = arith.constant 0 : i32
    %c0_i32_1 = arith.constant 0 : i32
    return %arg1, %c0_i32, %c0_i32_0 : i32, i32, i32
  }
  func.func @transform_9(%arg0: i32, %arg1: i32) -> (i32, i32, i32) {
    %c0_i32 = arith.constant 0 : i32
    %c0_i32_0 = arith.constant 0 : i32
    %c0_i32_1 = arith.constant 0 : i32
    return %arg1, %c0_i32, %c0_i32_0 : i32, i32, i32
  }
  func.func @transform_10(%arg0: i32, %arg1: i32) -> (i32, i32, i32) {
    %c0_i32 = arith.constant 0 : i32
    %c0_i32_0 = arith.constant 0 : i32
    %c0_i32_1 = arith.constant 0 : i32
    return %arg1, %c0_i32, %c0_i32_0 : i32, i32, i32
  }
  func.func @transform_11(%arg0: i32, %arg1: i32) -> (i32, i32, i32) {
    %c0_i32 = arith.constant 0 : i32
    %c0_i32_0 = arith.constant 0 : i32
    %c0_i32_1 = arith.constant 0 : i32
    return %arg1, %c0_i32, %c0_i32_0 : i32, i32, i32
  }
  func.func @transform_12(%arg0: i32, %arg1: i32) -> (i32, i32, i32) {
    %c0_i32 = arith.constant 0 : i32
    %c0_i32_0 = arith.constant 0 : i32
    %c0_i32_1 = arith.constant 0 : i32
    return %arg1, %c0_i32, %c0_i32_0 : i32, i32, i32
  }
  func.func @transform_13(%arg0: i32, %arg1: i32) -> (i32, i32, i32) {
    %c0_i32 = arith.constant 0 : i32
    %c0_i32_0 = arith.constant 0 : i32
    %c0_i32_1 = arith.constant 0 : i32
    return %arg1, %c0_i32, %c0_i32_0 : i32, i32, i32
  }
  func.func @transform_14(%arg0: i32, %arg1: i32) -> (i32, i32, i32) {
    %c0_i32 = arith.constant 0 : i32
    %c0_i32_0 = arith.constant 0 : i32
    %c0_i32_1 = arith.constant 0 : i32
    return %arg1, %c0_i32, %c0_i32_0 : i32, i32, i32
  }
  func.func @transform_15(%arg0: i32, %arg1: i32) -> (i32, i32) {
    %c0_i32 = arith.constant 0 : i32
    %c0_i32_0 = arith.constant 0 : i32
    %c0_i32_1 = arith.constant 0 : i32
    return %c0_i32, %c0_i32_0 : i32, i32
  }
  func.func @transform_16(%arg0: i32, %arg1: i32) -> (i32, i32) {
    %c0_i32 = arith.constant 0 : i32
    %c0_i32_0 = arith.constant 0 : i32
    %c0_i32_1 = arith.constant 0 : i32
    return %c0_i32, %c0_i32_0 : i32, i32
  }
  func.func @transform_17(%arg0: i32, %arg1: i32) -> (i32, i32) {
    %c0_i32 = arith.constant 0 : i32
    %c0_i32_0 = arith.constant 0 : i32
    %c0_i32_1 = arith.constant 0 : i32
    return %c0_i32, %c0_i32_0 : i32, i32
  }
  func.func @transform_18(%arg0: i32, %arg1: i32) -> (i32, i32) {
    %c0_i32 = arith.constant 0 : i32
    %c0_i32_0 = arith.constant 0 : i32
    %c0_i32_1 = arith.constant 0 : i32
    return %c0_i32, %c0_i32_0 : i32, i32
  }
  func.func @transform_19(%arg0: i32, %arg1: i32) -> (i32, i32, i32) {
    %c0_i32 = arith.constant 0 : i32
    %c0_i32_0 = arith.constant 0 : i32
    %c0_i32_1 = arith.constant 0 : i32
    return %arg0, %c0_i32, %c0_i32_0 : i32, i32, i32
  }
}

</mosaic_0001>

<bundles_post_ra>
// kernel: transformer_fft3d_forward.1
= control target key start
LH: loop header
LB: loop body
LE: loop exit
PB: predicated region body
PF: predicated region fallthrough
CT: control target
= control target key end

     0   :  { %s2761_s0 = inlined_call_operand.vmem [shape: f32[2,16,32], index: 0, kind: input, shape index: {}]   ;;  %s2762_s1 = inlined_call_operand.vmem [shape: f32[2,1,32], index: 1, kind: input, shape index: {}]   ;;  %s2763_s2 = inlined_call_operand.vmem [shape: f32[2,1,32], index: 2, kind: input, shape index: {}]   ;;  %s2764_s3 = inlined_call_operand.vmem [shape: bf16[2,32,32], index: 3, kind: input, shape index: {}]   ;;  %s2765_s4 = inlined_call_operand.vmem [shape: f32[2,1,32], index: 4, kind: input, shape index: {}]   ;;  %s2766_s5 = inlined_call_operand.vmem [shape: bf16[2,32,64], index: 5, kind: input, shape index: {}]   ;;  %s2767_s6 = inlined_call_operand.vmem [shape: f32[2,1,32], index: 6, kind: input, shape index: {}]   ;;  %s2768_s7 = inlined_call_operand.vmem [shape: bf16[2,32,32], index: 7, kind: input, shape index: {}]   ;;  %s2769_s8 = inlined_call_operand.vmem [shape: f32[2,1,32], index: 8, kind: input, shape index: {}]   ;;  %s2770_s9 = inlined_call_operand.vmem [shape: f32[2,1,32], index: 9, kind: input, shape index: {}]   ;;  %s2771_s10 = inlined_call_operand.vmem [shape: f32[2,1,32], index: 10, kind: input, shape index: {}]   ;;  %s2772_s11 = inlined_call_operand.vmem [shape: bf16[2,32,64], index: 11, kind: input, shape index: {}]   ;;  %s2773_s12 = inlined_call_operand.vmem [shape: f32[2,1,64], index: 12, kind: input, shape index: {}]   ;;  %s2774_s13 = inlined_call_operand.vmem [shape: bf16[2,64,32], index: 13, kind: input, shape index: {}]   ;;  %s2775_s14 = inlined_call_operand.vmem [shape: f32[2,1,32], index: 14, kind: input, shape index: {}]   ;;  %s2776_s15 = inlined_call_operand.vmem [shape: f32[1,32], index: 15, kind: input, shape index: {}]   ;;  %s2777_s16 = inlined_call_operand.vmem [shape: f32[1,32], index: 16, kind: input, shape index: {}]   ;;  %s2778_s17 = inlined_call_operand.vmem [shape: bf16[8,32], index: 17, kind: input, shape index: {}]   ;;  %s2779_s18 = inlined_call_operand.vmem [shape: f32[8,1], index: 18, kind: input, shape index: {}]   ;;  %s2780_s19 = inlined_call_operand.hbm [shape: f32[2,8,16], index: 19, kind: output, shape index: {}]  }
   0x1   :  { %2796 = sst [smem:[#allocation20_spill]] %s2761_s0 }
   0x2   :  { %2797 = sst [smem:[#allocation21_spill]] %s2762_s1 }
   0x3   :  { %2798 = sst [smem:[#allocation22_spill]] %s2763_s2 }
   0x4   :  { %2799 = sst [smem:[#allocation23_spill]] %s2764_s3 }
   0x5   :  { %2800 = sst [smem:[#allocation24_spill]] %s2766_s5 }
   0x6   :  { %2801 = sst [smem:[#allocation25_spill]] %s2768_s7 }
   0x7   :  { %2802 = sst [smem:[#allocation26_spill]] %s2770_s9 }
   0x8   :  { %2803 = sst [smem:[#allocation27_spill]] %s2774_s13 }
   0x9   :  { %2804 = sst [smem:[#allocation28_spill]] %s2775_s14 }
   0xa   :  { %2805 = sst [smem:[#allocation29_spill]] %s2776_s15 }
   0xb   :  { %2806 = sst [smem:[#allocation30_spill]] %s2777_s16 }
   0xc   :  { %2807 = sst [smem:[#allocation31_spill]] %s2778_s17 }
   0xd   :  { %2808 = sst [smem:[#allocation32_spill]] %s2779_s18 }
   0xe   :  { %2809 = sst [smem:[#allocation33_spill]] %s2780_s19 }
   0xf   :  { %24 = vsyncpa [#allocation5], 0 }
  0x10   :  { %26 = vsyncpa [#allocation5 + $0x1], 0  ;;  %s2384_s0 = smov 0   ;;  %s2386_s30 = smov 0  }
  0x11   :  { %s2388_s20 = smov 0   ;;  %s2390_s21 = smov 0  }
  0x12   :  { %s2392_s1 = smov 0   ;;  %s2394_s22 = smov 0  }
  0x13   :  { %s2396_s2 = smov 0   ;;  %s2398_s23 = smov 0  }
  0x14 LB: > { %2810 = sst [smem:[#allocation7_spill]] %s2241_s0  ;;  %s1915_s24 = sadd.s32 4294967295, %s2269_s23   ;;  %s2269_s23 = sphi %s2398_s23, %s32_s23   ;;  %s2265_s2 = sphi %s2396_s2, %s2864_s2   ;;  %s2261_s22 = sphi %s2394_s22, %s2863_s22   ;;  %s2257_s1 = sphi %s2392_s1, %s2862_s1   ;;  %s2253_s21 = sphi %s2390_s21, %s2861_s21   ;;  %s2249_s20 = sphi %s2388_s20, %s2860_s20   ;;  %s2245_s30 = sphi %s2386_s30, %s2859_s30   ;;  %s2241_s0 = sphi %s2384_s0, %s2858_s0  }
  0x15   : > { %2811 = sst [smem:[#allocation8_spill]] %s2245_s30  ;;  %s1916_s25 = sadd.s32 4294967294, %s2269_s23  }
  0x16   : > { %2812 = sst [smem:[#allocation9_spill]] %s2249_s20  ;;  %s41_s3 = sadd.s32 1, %s2261_s22 }
  0x17   : > { %2813 = sst [smem:[#allocation10_spill]] %s2253_s21  ;;  %p42_p0 = scmp.ge.s32.totalorder %s41_s3, 2 }
  0x18   : > { %2814 = sst [smem:[#allocation11_spill]] %s2257_s1  ;;  %s44_s26 = sadd.s32 1, %s2265_s2 }
  0x19   : > { %2815 = sst [smem:[#allocation12_spill]] %s2261_s22  ;;  %p535_p1 = scmp.ne.s32.totalorder %s2249_s20, %s2245_s30 }
  0x1a   : > { %2816 = sst [smem:[#allocation13_spill]] %s2265_s2  ;;  %p536_p2 = scmp.eq.s32.totalorder %s1915_s24, 3 }
  0x1b   : > { %2817 = sst [smem:[#allocation14_spill]] %s2269_s23  ;;  %s2866_s3 = smov (%p42_p0, %s41_s3), 0 }
  0x1c   : > { %2818 = sst [smem:[#allocation15_spill]] %s2866_s3  ;;  %s2868_s26 = smov (!%p42_p0, %s44_s26), %s2265_s2 }
  0x1d   : > { %p2433_p3 = por %p536_p2, %p535_p1  ;;  %p541_p4 = scmp.ne.s32.totalorder %s2245_s30, %s2241_s0 }
  0x1e   : > { %p46_p5 = scmp.ge.s32.totalorder %s2868_s26, 2  ;;  %p542_p6 = scmp.eq.s32.totalorder %s1916_s25, 3 }
  0x1f   : > { %s2819_s27 = scalar_select %p2433_p3, 1, 0 }
  0x20   : > { %p1919_p7 = scmp.ge.s32.totalorder %s2269_s23, 1  ;;  %p674_p8 = scmp.lt.s32.totalorder %s2269_s23, 5 }
  0x21   : > { %2820 = sst [smem:[#allocation16_spill]] %s2819_s27  ;;  %s2870_s26 = smov (%p46_p5, %s2868_s26), 0 }
  0x22   : > { %2821 = sst [smem:[#allocation17_spill]] %s2870_s26  ;;  %p2443_p9 = por %p542_p6, %p541_p4 }
  0x23   : > { %p675_p10 = pnand %p1919_p7, %p674_p8  ;;  %s522_s29 = ssub.s32 %s2265_s2, %s2870_s26 }
  0x24   : > { %s2822_s28 = scalar_select %p2443_p9, 1, 0 }
  0x25   : > { %s525_s24 = sadd.s32 1, %s2249_s20  ;;  %p523_p11 = scmp.eq.s32.totalorder %s522_s29, 0 }
  0x26   : > { %2823 = sst [smem:[#allocation18_spill]] %s2822_s28  ;;  %678 = sbr.rel (%p675_p10) target bundleno = 2782 (0xade), region = 96 }
  0x27   : > { %s2451_s3 = scalar_select %p523_p11, %s2249_s20, %s525_s24  }
  0x28   : > { %s2786_s25 = sand.u32 (!%p675_p10), 1, %s2245_s30   ;;  %p782_p12 = scmp.lt.s32.totalorder (!%p675_p10), %s2257_s1, 1 }
  0x29   : > { %2824 = sst [smem:[#allocation19_spill]] %s2451_s3  ;;  %s2457_s22 = sshll.u32 (!%p675_p10), %s2786_s25, 3 }
  0x2a   : > { %p787_p13 = scmp.lt.s32.totalorder (!%p675_p10), %s2253_s21, 1  ;;  %s2825_s2 = sld [smem:[#allocation20_spill]] (!%p675_p10) }
  0x2b   : > { %s783_s28 = scalar_select %p782_p12, %s2257_s1, 1 }
  0x2c   : > { %s2462_s0 = scalar_select %p787_p13, %s2253_s21, 1 }
  0x2d   : > { %s2005_s29 = sshll.u32 %s783_s28, 4  ;;  %s2828_s21 = sld [smem:[#allocation23_spill]] }
  0x2e   : > { %s2006_s16 = sshll.u32 %s2462_s0, 4  ;;  %s2829_s5 = sld [smem:[#allocation24_spill]] }
  0x2f   : > { %s2830_s7 = sld [smem:[#allocation25_spill]]  ;;  %s822_s17 = scalar_lea.vmem %s2771_s10, %s2462_s0 }
  0x30   : > { %s786_s25 = scalar_lea.vmem %s2825_s2, %s2005_s29  ;;  %s2514_s3 = scalar_lea.vmem %s2772_s11, %s2006_s16 }
  0x31   : > { %s830_s30 = scalar_lea.vmem %s2773_s12, %s2462_s0  ;;  %s2833_s26 = sld [smem:[#allocation27_spill]] }
  0x32   : > { %s781_s2 = scalar_lea.vmem [#allocation4], %s2457_s22  ;;  %s2834_s29 = sld [smem:[#allocation10_spill]] }
  0x33   : > { %s2479_s13 = scalar_lea.vmem %s2828_s21, %s2006_s16  ;;  %s2832_s21 = sld [smem:[#allocation28_spill]] }
  0x34   : > { %s2488_s20 = scalar_lea.vmem %s2829_s5, %s2006_s16  ;;  %s2010_s5 = sshll.u32 %s2462_s0, 5 }
  0x35   : > { %s2497_s24 = scalar_lea.vmem %s2830_s7, %s2006_s16 }
  0x37   : > { %s2528_s9 = scalar_lea.vmem %s2833_s26, %s2010_s5 }
  0x38   : > { %p1933_p0 = scmp.ne.s32.totalorder %s2834_s29, 0 }
  0x39   : > { %s838_s7 = scalar_lea.vmem %s2832_s21, %s2462_s0 }
  0x3a   : > { %843 = sbr.rel (%p1933_p0) target bundleno = 66 (0x42), region = 100 }
  0x3f   : > { %v844_v0 = vld [vmem:[%s786_s25] sm:$0xff]  ;;  %vm846_vm0 = vcmask 261120   ;;  %v845_v1 = vld [vmem:[%s786_s25 + $0x8] sm:$0xff] }
  0x40   : > { %847 = vst.msk [vmem:[#allocation2] sm:$0xff] %vm846_vm0, %v844_v0 }
  0x41   : > { %848 = vst.msk [vmem:[#allocation2 + $0x8] sm:$0xff] %vm846_vm0, %v845_v1 }
  0x42 PF: > { %vm853_vm1 = vcmask 261120   ;;  %v2271_v6 = vmov 32.0   ;;  %v2014_v23 = vld [vmem:[%s2488_s20 + $0x8] sm:$0xff]  ;;  %v2013_v24 = vld [vmem:[%s2488_s20] sm:$0xff]  ;;  %s2835_s19 = scalar_lea.vmem %s2767_s6, %s2462_s0  ;;  %s2272_s25 = smov 32   ;;  %vm998_vm9 = vcmask 64512  }
  0x43   : > { %2117 = vrcp.f32 %v2271_v6  ;;  %979 = vmatpush.bf16.msra.mxu1 %v2014_v23  ;;  %v2012_v26 = vld [vmem:[%s2479_s13 + $0x8] sm:$0xff]  ;;  %v2011_v28 = vld [vmem:[%s2479_s13] sm:$0xff]  ;;  %s2836_s20 = sld [smem:[#allocation21_spill]]  ;;  %s2840_s28 = scalar_lea.vmem %s2765_s4, %s2462_s0  ;;  %vm1021_vm10 = vcmask 130048   ;;  %vm1068_vm11 = vcmask 60416   ;;  %vm1152_vm12 = vcmask 126016  }
  0x44   : > { %945 = vmatpush.bf16.msra.mxu0 %v2012_v26  ;;  %v2110_v31 = vld [vmem:[%s2835_s19] ss:$0 sm:$0xff]  ;;  %s2838_s27 = sld [smem:[#allocation22_spill]]  ;;  %s2273_s29 = smov 120   ;;  %vm1234_vm13 = vcmask 191616   ;;  %vm1316_vm14 = vcmask 257216  }
  0x45   : > { %v2111_v63 = vld [vmem:[%s2840_s28] ss:$0 sm:$0xff]  ;;  %s2274_s5 = smov 112   ;;  %s2275_s16 = smov 104  }
  0x46   : > { %s2276_s19 = smov 96   ;;  %s2278_s13 = smov 72  }
  0x47   : > { %v2532_v2 = vld [vmem:[#allocation2] sm:$0xff]  ;;  %980 = vmatpush.bf16.msra.mxu1 %v2013_v24  ;;  %s2279_s26 = smov 80   ;;  %s2282_s23 = smov 24  }
  0x48   : > { %v854_v3 = vsel %vm853_vm1, %v2532_v2, 0.0  ;;  %v2536_v4 = vld [vmem:[#allocation2 + $0x8] sm:$0xff]  ;;  %946 = vmatpush.bf16.msra.mxu0 %v2011_v28  ;;  %s2842_s18 = sld [smem:[#allocation26_spill]] }
  0x49   : > { %855 = vadd.xlane.f32.xlu0 %v854_v3  ;;  %v857_v5 = vsel %vm853_vm1, %v2536_v4, 0.0  ;;  %v2118_v7 = vpop.eup %2117  ;;  %v953_v25 = vpack.c.bf16 %v2536_v4, %v2532_v2  ;;  %s2837_s21 = scalar_lea.vmem %s2836_s20, %s2462_s0  ;;  %s2280_s20 = smov 8  }
  0x4a   : > { %v861_v8 = vmul.f32 32.0, %v2118_v7  ;;  %vm865_vm2 = vweird.f32 %v2118_v7  ;;  %v2108_v48 = vld [vmem:[%s2837_s21] ss:$0 sm:$0xff]  ;;  %s2839_s15 = scalar_lea.vmem %s2838_s27, %s2462_s0  ;;  %s2281_s21 = smov 16  }
  0x4b   : > { %1951 = vmatmul.msk.bf16.vlgmr.msra.gmra.mxu1 %vm853_vm1, %v953_v25  ;;  %v2109_v53 = vld [vmem:[%s2839_s15] ss:$0 sm:$0xff] }
  0x4c   : > { %v862_v9 = vsub.f32 1.0, %v861_v8 }
  0x4e   : > { %v863_v10 = vmul.f32 %v2118_v7, %v862_v9  ;;  %s2843_s14 = scalar_lea.vmem %s2842_s18, %s2462_s0 }
  0x50   : > { %v864_v11 = vadd.f32 %v2118_v7, %v863_v10 }
  0x51   : > { %858 = vadd.xlane.f32.xlu0 %v857_v5 }
  0x52   : > { %v2540_v12 = vsel %vm865_vm2, %v2118_v7, %v864_v11 }
  0x65   : > { %990 = vrot.lane.b32.xlu0 %v2110_v31, %s2272_s25  ;;  %s2277_s25 = smov 88  }
  0xbc   : > { %v856_v13 = vpop.xlane.xlu0 %855 }
  0xbd   : > { %v867_v14 = vmul.f32 %v2540_v12, %v856_v13 }
  0xbf   : > { %v869_v15 = vsub.f32 %v2532_v2, %v867_v14 }
  0xc1   : > { %v871_v16 = vmul.f32 %v869_v15, %v869_v15 }
  0xc3   : > { %v873_v17 = vsel %vm853_vm1, %v871_v16, 0.0 }
  0xc4   : > { %874 = vadd.xlane.f32.xlu1 %v873_v17  ;;  %v859_v18 = vpop.xlane.xlu0 %858 }
  0xc5   : > { %v868_v19 = vmul.f32 %v2540_v12, %v859_v18 }
  0xc7   : > { %v870_v20 = vsub.f32 %v2536_v4, %v868_v19 }
  0xc8   : > { %v982_v58 = vpop.f32.mrf.mxu1 }
  0xc9   : > { %v872_v21 = vmul.f32 %v870_v20, %v870_v20 }
  0xcb   : > { %v876_v22 = vsel %vm853_vm1, %v872_v21, 0.0 }
  0xcc   : > { %877 = vadd.xlane.f32.xlu1 %v876_v22 }
  0xd0   : > { %v984_v59 = vpop.f32.mrf.mxu1 }
  0xd1   : > { %v996_v60 = vpack.c.bf16 %v984_v59, %v982_v58 }
  0xd3   : > { %v1003_v61 = vsel %vm998_vm9, %v996_v60, 0 }
  0xd4   : > { %1012 = vmatpush.bf16.xpose.msra.mxu2 %v1003_v61 }
  0xd7   : > { %v991_v6 = vpop.permute.xlu0 %990 }
  0xd8   : > { %v994_v28 = vadd.f32 %v991_v6, %v984_v59 }
 0x137   : > { %v875_v27 = vpop.xlane.xlu1 %874 }
 0x138   : > { %v879_v29 = vmul.f32 %v875_v27, %v2540_v12  ;;  %v993_v27 = vadd.f32 %v991_v6, %v982_v58 }
 0x13a   : > { %v881_v30 = vadd.f32 1e-05, %v879_v29  ;;  %v2587_v29 = vpack.c.bf16 %v994_v28, %v993_v27 }
 0x13c   : > { %2119 = vrsqrt.f32 %v881_v30  ;;  %vm889_vm4 = vweird.f32 %v881_v30 }
 0x13f   : > { %v878_v32 = vpop.xlane.xlu1 %877 }
 0x140   : > { %v880_v33 = vmul.f32 %v878_v32, %v2540_v12 }
 0x142   : > { %v2120_v34 = vpop.eup %2119  ;;  %v882_v35 = vadd.f32 1e-05, %v880_v33 }
 0x143   : > { %v884_v36 = vmul.f32 %v2120_v34, %v881_v30  ;;  %vm890_vm3 = vweird.f32 %v2120_v34 }
 0x144   : > { %2121 = vrsqrt.f32 %v882_v35  ;;  %vm891_vm5 = vmor %vm889_vm4, %vm890_vm3  ;;  %vm899_vm7 = vweird.f32 %v882_v35 }
 0x145   : > { %v885_v37 = vmul.f32 %v2120_v34, %v884_v36 }
 0x147   : > { %v886_v38 = vmul.f32 0.5, %v885_v37 }
 0x149   : > { %v887_v39 = vsub.f32 1.5, %v886_v38 }
 0x14a   : > { %v2122_v40 = vpop.eup %2121 }
 0x14b   : > { %v888_v41 = vmul.f32 %v2120_v34, %v887_v39  ;;  %v894_v42 = vmul.f32 %v2122_v40, %v882_v35  ;;  %vm900_vm6 = vweird.f32 %v2122_v40 }
 0x14c   : > { %vm901_vm8 = vmor %vm899_vm7, %vm900_vm6 }
 0x14d   : > { %v895_v43 = vmul.f32 %v2122_v40, %v894_v42  ;;  %v892_v44 = vsel %vm891_vm5, %v2120_v34, %v888_v41 }
 0x14e   : > { %v903_v47 = vmul.f32 %v892_v44, %v869_v15 }
 0x14f   : > { %v896_v45 = vmul.f32 0.5, %v895_v43 }
 0x150   : > { %v908_v52 = vmul.f32 %v2108_v48, %v903_v47 }
 0x151   : > { %v897_v46 = vsub.f32 1.5, %v896_v45 }
 0x152   : > { %v913_v55 = vadd.f32 %v2109_v53, %v908_v52 }
 0x153   : > { %v898_v49 = vmul.f32 %v2122_v40, %v897_v46 }
 0x155   : > { %v902_v50 = vsel %vm901_vm8, %v2122_v40, %v898_v49 }
 0x156   : > { %v904_v51 = vmul.f32 %v902_v50, %v870_v20 }
 0x158   : > { %v909_v54 = vmul.f32 %v2108_v48, %v904_v51 }
 0x15a   : > { %v914_v56 = vadd.f32 %v2109_v53, %v909_v54 }
 0x15c   : > { %v915_v57 = vpack.c.bf16 %v914_v56, %v913_v55 }
 0x15e   : > { %1942 = vmatmul.msk.bf16.vlgmr.msra.gmra.mxu0 %vm853_vm1, %v915_v57 }
 0x1db   : > { %v948_v62 = vpop.f32.mrf.mxu0 }
 0x1dc   : > { %v949_v1 = vadd.f32 %v2111_v63, %v948_v62 }
 0x1e3   : > { %v950_v0 = vpop.f32.mrf.mxu0 }
 0x1e4   : > { %v951_v3 = vadd.f32 %v2111_v63, %v950_v0 }
 0x1e6   : > { %v995_v5 = vpack.c.bf16 %v951_v3, %v949_v1 }
 0x1e8   : > { %1072 = vrot.lane.b32.xlu0 %v995_v5, %s2273_s29  ;;  %1952 = vmatmul.msk.bf16.vlgmr.msra.gmra.mxu2 %vm998_vm9, %v995_v5 }
 0x1f0   : > { %1157 = vrot.lane.b32.xlu0 %v996_v60, %s2274_s5 }
 0x1f8   : > { %1237 = vrot.lane.b32.xlu0 %v995_v5, %s2275_s16 }
 0x25a   : > { %v1073_v7 = vpop.permute.xlu0 %1072 }
 0x262   : > { %v1158_v8 = vpop.permute.xlu0 %1157 }
 0x263   : > { %v1163_v9 = vsel %vm998_vm9, %v1158_v8, 0 }
 0x264   : > { %1172 = vmatpush.bf16.xpose.msrb.mxu1 %v1163_v9 }
 0x26a   : > { %v1238_v43 = vpop.permute.xlu0 %1237 }
 0x26b   : > { %v1014_v10 = vpop.f32.mrf.mxu2 }
 0x26c   : > { %v1019_v11 = vmul.f32 0.35355338, %v1014_v10 }
 0x26e   : > { %v1022_v13 = vsel %vm1021_vm10, %v1019_v11, -inf }
 0x26f   : > { %1023 = vmax.xlane.f32.xlu2 %v1022_v13 }
 0x273   : > { %v1016_v14 = vpop.f32.mrf.mxu2 }
 0x274   : > { %v1020_v15 = vmul.f32 0.35355338, %v1016_v14 }
 0x276   : > { %v1025_v16 = vsel %vm1021_vm10, %v1020_v15, -inf }
 0x277   : > { %1026 = vmax.xlane.f32.xlu2 %v1025_v16 }
 0x28f   : > { %1075 = vrot.lane.b32.xlu2 %v996_v60, %s2273_s29 }
 0x2e2   : > { %v1024_v17 = vpop.xlane.xlu2 %1023 }
 0x2e3   : > { %v1028_v18 = vsub.f32 %v1019_v11, %v1024_v17 }
 0x2e5   : > { %v1030_v19 = vmul.f32 1.442695, %v1028_v18 }
 0x2e7   : > { %2123 = vpow2.f32 %v1030_v19 }
 0x2ea   : > { %v1027_v20 = vpop.xlane.xlu2 %1026 }
 0x2eb   : > { %v1029_v21 = vsub.f32 %v1020_v15, %v1027_v20 }
 0x2ed   : > { %v2124_v22 = vpop.eup %2123  ;;  %v1032_v23 = vmul.f32 1.442695, %v1029_v21 }
 0x2ee   : > { %v1034_v24 = vsel %vm1021_vm10, %v2124_v22, 0.0 }
 0x2ef   : > { %2125 = vpow2.f32 %v1032_v23  ;;  %1035 = vadd.xlane.f32.xlu1 %v1034_v24 }
 0x2f2   : > { %v1076_v30 = vpop.permute.xlu2 %1075 }
 0x2f3   : > { %v1081_v39 = vsel %vm998_vm9, %v1076_v30, 0 }
 0x2f5   : > { %v2126_v25 = vpop.eup %2125 }
 0x2f6   : > { %v1037_v26 = vsel %vm1021_vm10, %v2126_v25, 0.0 }
 0x2f7   : > { %1038 = vadd.xlane.f32.xlu2 %v1037_v26 }
 0x308   : > { %1046 = vrot.lane.b32.xlu1 %v2587_v29, %s2276_s19  ;;  %s2845_s19 = sld [smem:[#allocation10_spill]] }
 0x30e   : > { %p1999_p1 = scmp.ne.s32.totalorder %s2845_s19, 1 }
 0x30f   : > { %1239 = vrot.lane.b32.xlu2 %v996_v60, %s2275_s16  ;;  %s2848_s1 = sld [smem:[#allocation30_spill]] (!%p1999_p1) }
 0x310   : > { %1155 = vrot.lane.b32.xlu1 %v995_v5, %s2274_s5 }
 0x362   : > { %v1036_v32 = vpop.xlane.xlu1 %1035 }
 0x36a   : > { %v1039_v31 = vpop.xlane.xlu2 %1038 }
 0x36b   : > { %2127 = vrcp.f32 %v1039_v31 }
 0x36c   : > { %2129 = vrcp.f32 %v1036_v32 }
 0x371   : > { %v2128_v33 = vpop.eup %2127 }
 0x372   : > { %v2130_v34 = vpop.eup %2129  ;;  %v1043_v35 = vmul.f32 %v2128_v33, %v2126_v25  ;;  %v1240_v38 = vpop.permute.xlu2 %1239 }
 0x373   : > { %v1042_v37 = vmul.f32 %v2130_v34, %v2124_v22  ;;  %v1245_v41 = vsel %vm998_vm9, %v1240_v38, 0 }
 0x375   : > { %v1044_v40 = vpack.c.bf16 %v1043_v35, %v1042_v37 }
 0x37a   : > { %v1047_v36 = vpop.permute.xlu1 %1046 }
 0x37b   : > { %1059 = vmatpush.bf16.msra.mxu3 %v1047_v36 }
 0x37e   : > { %1953 = vmatmul.msk.bf16.vlgmr.msra.gmra.mxu3 %vm1021_vm10, %v1044_v40 }
 0x37f   : > { %1090 = vmatpush.bf16.xpose.msrb.mxu3 %v1081_v39 }
 0x382   : > { %v1156_v42 = vpop.permute.xlu1 %1155 }
 0x383   : > { %1956 = vmatmul.msk.bf16.vlgmr.msrb.gmra.mxu1 %vm998_vm9, %v1156_v42 }
 0x387   : > { %1254 = vmatpush.bf16.xpose.msra.mxu3 %v1245_v41 }
 0x38e   : > { %1954 = vmatmul.msk.bf16.vlgmr.msrb.gmra.mxu3 %vm998_vm9, %v1073_v7 }
 0x39e   : > { %1958 = vmatmul.msk.bf16.vlgmr.msra.gmra.mxu3 %vm998_vm9, %v1238_v43 }
 0x400   : > { %v1174_v44 = vpop.f32.mrf.mxu1 }
 0x401   : > { %v1179_v45 = vmul.f32 0.35355338, %v1174_v44  ;;  %v1061_v46 = vpop.f32.mrf.mxu3 }
 0x402   : > { %v1066_v47 = vpack.c.bf16 %v1061_v46, %v1061_v46 }
 0x403   : > { %v1181_v48 = vsel %vm1021_vm10, %v1179_v45, -inf }
 0x404   : > { %1069 = vst.msk [vmem:[#allocation3] sm:$0xf] %vm1068_vm11, %v1066_v47  ;;  %1182 = vmax.xlane.f32.xlu0 %v1181_v48 }
 0x408   : > { %v1176_v54 = vpop.f32.mrf.mxu1 }
 0x409   : > { %v1063_v49 = vpop.f32.mrf.mxu3  ;;  %v1180_v55 = vmul.f32 0.35355338, %v1176_v54 }
 0x40a   : > { %v1067_v50 = vpack.c.bf16 %v1063_v49, %v1063_v49 }
 0x40b   : > { %v1184_v59 = vsel %vm1021_vm10, %v1180_v55, -inf }
 0x40c   : > { %1070 = vst.msk [vmem:[#allocation3 + $0x4] sm:$0xf] %vm1068_vm11, %v1067_v50 }
 0x411   : > { %v1092_v51 = vpop.f32.mrf.mxu3 }
 0x412   : > { %v1097_v52 = vmul.f32 0.35355338, %v1092_v51 }
 0x414   : > { %v1099_v53 = vsel %vm1021_vm10, %v1097_v52, -inf }
 0x415   : > { %1100 = vmax.xlane.f32.xlu2 %v1099_v53 }
 0x419   : > { %v1094_v56 = vpop.f32.mrf.mxu3 }
 0x41a   : > { %v1098_v57 = vmul.f32 0.35355338, %v1094_v56 }
 0x41c   : > { %v1102_v58 = vsel %vm1021_vm10, %v1098_v57, -inf }
 0x41d   : > { %1103 = vmax.xlane.f32.xlu1 %v1102_v58  ;;  %1185 = vmax.xlane.f32.xlu2 %v1184_v59 }
 0x421   : > { %v1256_v60 = vpop.f32.mrf.mxu3 }
 0x422   : > { %v1261_v61 = vmul.f32 0.35355338, %v1256_v60 }
 0x424   : > { %v1263_v62 = vsel %vm1021_vm10, %v1261_v61, -inf }
 0x425   : > { %1264 = vmax.xlane.f32.xlu1 %v1263_v62 }
 0x429   : > { %v1258_v63 = vpop.f32.mrf.mxu3 }
 0x42a   : > { %v1262_v0 = vmul.f32 0.35355338, %v1258_v63 }
 0x42c   : > { %v1266_v1 = vsel %vm1021_vm10, %v1262_v0, -inf }
 0x42d   : > { %1267 = vmax.xlane.f32.xlu0 %v1266_v1 }
 0x441   : > { %1122 = vrot.lane.b32.xlu0 %v2587_v29, %s2277_s25  ;;  %s2846_s25 = sld [smem:[#allocation32_spill]] (!%p1999_p1) }
 0x449   : > { %1286 = vrot.lane.b32.xlu0 %v2587_v29, %s2278_s13 }
 0x477   : > { %v1183_v3 = vpop.xlane.xlu0 %1182 }
 0x478   : > { %v1187_v5 = vsub.f32 %v1179_v45, %v1183_v3 }
 0x47a   : > { %v1189_v6 = vmul.f32 1.442695, %v1187_v5 }
 0x47c   : > { %2131 = vpow2.f32 %v1189_v6 }
 0x482   : > { %v2132_v7 = vpop.eup %2131 }
 0x483   : > { %v1193_v8 = vsel %vm1021_vm10, %v2132_v7, 0.0 }
 0x484   : > { %1194 = vadd.xlane.f32.xlu2 %v1193_v8 }
 0x488   : > { %v1101_v9 = vpop.xlane.xlu2 %1100 }
 0x489   : > { %v1105_v10 = vsub.f32 %v1097_v52, %v1101_v9  ;;  %v2017_v9 = vld [vmem:[%s2497_s24 + $0x8] sm:$0xff] }
 0x48a   : > { %1355 = vmatpush.bf16.msra.mxu1 %v2017_v9 }
 0x48b   : > { %v1107_v11 = vmul.f32 1.442695, %v1105_v10 }
 0x48d   : > { %2133 = vpow2.f32 %v1107_v11  ;;  %v2016_v11 = vld [vmem:[%s2497_s24] sm:$0xff]  ;;  %s2841_s24 = scalar_lea.vmem %s2769_s8, %s2462_s0 }
 0x48e   : > { %1356 = vmatpush.bf16.msra.mxu1 %v2016_v11 }
 0x490   : > { %v1104_v13 = vpop.xlane.xlu1 %1103  ;;  %v1186_v14 = vpop.xlane.xlu2 %1185 }
 0x491   : > { %v1106_v15 = vsub.f32 %v1098_v57, %v1104_v13  ;;  %v1188_v18 = vsub.f32 %v1180_v55, %v1186_v14 }
 0x493   : > { %v2134_v16 = vpop.eup %2133  ;;  %v1109_v17 = vmul.f32 1.442695, %v1106_v15  ;;  %v1191_v20 = vmul.f32 1.442695, %v1188_v18 }
 0x494   : > { %v1111_v19 = vsel %vm1021_vm10, %v2134_v16, 0.0 }
 0x495   : > { %2135 = vpow2.f32 %v1109_v17  ;;  %1112 = vadd.xlane.f32.xlu2 %v1111_v19  ;;  %v2112_v19 = vld [vmem:[%s2841_s24] ss:$0 sm:$0xff] }
 0x496   : > { %2137 = vpow2.f32 %v1191_v20 }
 0x498   : > { %v1265_v21 = vpop.xlane.xlu1 %1264 }
 0x499   : > { %v1269_v22 = vsub.f32 %v1261_v61, %v1265_v21 }
 0x49b   : > { %v2136_v23 = vpop.eup %2135  ;;  %v1271_v24 = vmul.f32 1.442695, %v1269_v22 }
 0x49c   : > { %v1114_v25 = vsel %vm1021_vm10, %v2136_v23, 0.0  ;;  %v2138_v27 = vpop.eup %2137 }
 0x49d   : > { %2139 = vpow2.f32 %v1271_v24  ;;  %1115 = vadd.xlane.f32.xlu1 %v1114_v25  ;;  %v1196_v32 = vsel %vm1021_vm10, %v2138_v27, 0.0 }
 0x4a0   : > { %v1268_v26 = vpop.xlane.xlu0 %1267 }
 0x4a1   : > { %v1270_v28 = vsub.f32 %v1262_v0, %v1268_v26 }
 0x4a3   : > { %v2140_v30 = vpop.eup %2139  ;;  %v1273_v31 = vmul.f32 1.442695, %v1270_v28 }
 0x4a4   : > { %v1275_v33 = vsel %vm1021_vm10, %v2140_v30, 0.0 }
 0x4a5   : > { %2141 = vpow2.f32 %v1273_v31  ;;  %1197 = vadd.xlane.f32.xlu1 %v1196_v32  ;;  %1276 = vadd.xlane.f32.xlu2 %v1275_v33 }
 0x4ab   : > { %v2142_v34 = vpop.eup %2141 }
 0x4ac   : > { %v1278_v35 = vsel %vm1021_vm10, %v2142_v34, 0.0 }
 0x4ad   : > { %1279 = vadd.xlane.f32.xlu1 %v1278_v35 }
 0x4b3   : > { %v1123_v36 = vpop.permute.xlu0 %1122 }
 0x4b4   : > { %1135 = vmatpush.bf16.msrb.mxu0 %v1123_v36 }
 0x4bb   : > { %v1287_v37 = vpop.permute.xlu0 %1286 }
 0x4bc   : > { %1299 = vmatpush.bf16.msra.mxu0 %v1287_v37  ;;  %v2019_v37 = vld [vmem:[%s2514_s3 + $0x8] sm:$0xff] }
 0x4bd   : > { %1204 = vrot.lane.b32.xlu2 %v2587_v29, %s2279_s26 }
 0x4f7   : > { %v1195_v38 = vpop.xlane.xlu2 %1194 }
 0x508   : > { %v1113_v39 = vpop.xlane.xlu2 %1112 }
 0x509   : > { %2143 = vrcp.f32 %v1113_v39 }
 0x50f   : > { %v2144_v41 = vpop.eup %2143 }
 0x510   : > { %v1116_v40 = vpop.xlane.xlu1 %1115  ;;  %v1119_v43 = vmul.f32 %v2144_v41, %v2134_v16  ;;  %v2018_v41 = vld [vmem:[%s2514_s3] sm:$0xff]  ;;  %s2849_s3 = sld [smem:[#allocation31_spill]] (!%p1999_p1) }
 0x511   : > { %2145 = vrcp.f32 %v1116_v40 }
 0x512   : > { %2147 = vrcp.f32 %v1195_v38 }
 0x517   : > { %v2146_v42 = vpop.eup %2145 }
 0x518   : > { %v1120_v44 = vmul.f32 %v2146_v42, %v2136_v23  ;;  %v1198_v45 = vpop.xlane.xlu1 %1197  ;;  %v1277_v46 = vpop.xlane.xlu2 %1276 }
 0x519   : > { %2149 = vrcp.f32 %v1198_v45  ;;  %v2148_v48 = vpop.eup %2147 }
 0x51a   : > { %v1121_v47 = vpack.c.bf16 %v1120_v44, %v1119_v43  ;;  %2151 = vrcp.f32 %v1277_v46  ;;  %v1201_v29 = vmul.f32 %v2148_v48, %v2132_v7 }
 0x51c   : > { %1955 = vmatmul.msk.bf16.vlgmr.msrb.gmra.mxu0 %vm1021_vm10, %v1121_v47 }
 0x51f   : > { %v2150_v49 = vpop.eup %2149 }
 0x520   : > { %v1202_v50 = vmul.f32 %v2150_v49, %v2138_v27  ;;  %v1205_v51 = vpop.permute.xlu2 %1204  ;;  %v1280_v52 = vpop.xlane.xlu1 %1279 }
 0x521   : > { %2153 = vrcp.f32 %v1280_v52  ;;  %1217 = vmatpush.bf16.msrb.mxu2 %v1205_v51  ;;  %v2152_v54 = vpop.eup %2151 }
 0x522   : > { %v1203_v53 = vpack.c.bf16 %v1202_v50, %v1201_v29  ;;  %v1283_v56 = vmul.f32 %v2152_v54, %v2140_v30 }
 0x524   : > { %1957 = vmatmul.msk.bf16.vlgmr.msrb.gmra.mxu2 %vm1021_vm10, %v1203_v53 }
 0x525   : > { %1451 = vmatpush.bf16.msra.mxu2 %v2019_v37 }
 0x527   : > { %v2154_v55 = vpop.eup %2153 }
 0x528   : > { %v1284_v57 = vmul.f32 %v2154_v55, %v2142_v34 }
 0x529   : > { %1452 = vmatpush.bf16.msra.mxu2 %v2018_v41 }
 0x52a   : > { %v1285_v58 = vpack.c.bf16 %v1284_v57, %v1283_v56  ;;  %v2113_v56 = vld [vmem:[%s2843_s14] ss:$0 sm:$0xff] }
 0x52c   : > { %1959 = vmatmul.msk.bf16.vlgmr.msra.gmra.mxu0 %vm1021_vm10, %v1285_v58 }
 0x599   : > { %v1137_v59 = vpop.f32.mrf.mxu0 }
 0x59a   : > { %v1142_v60 = vpack.c.bf16 %v1137_v59, %v1137_v59 }
 0x59c   : > { %1146 = vrot.lane.b32.xlu1 %v1142_v60, %s2280_s20  ;;  %v2114_v60 = vld [vmem:[%s822_s17] ss:$0 sm:$0xff] }
 0x5a1   : > { %v1139_v61 = vpop.f32.mrf.mxu0 }
 0x5a2   : > { %v1143_v3 = vpack.c.bf16 %v1139_v61, %v1139_v61 }
 0x5a7   : > { %v1219_v62 = vpop.f32.mrf.mxu2 }
 0x5a8   : > { %v1224_v63 = vpack.c.bf16 %v1219_v62, %v1219_v62 }
 0x5a9   : > { %v1301_v0 = vpop.f32.mrf.mxu0 }
 0x5aa   : > { %1228 = vrot.lane.b32.xlu0 %v1224_v63, %s2281_s21  ;;  %v1306_v8 = vpack.c.bf16 %v1301_v0, %v1301_v0 }
 0x5af   : > { %v1221_v1 = vpop.f32.mrf.mxu2 }
 0x5b0   : > { %v1225_v5 = vpack.c.bf16 %v1221_v1, %v1221_v1 }
 0x5b1   : > { %v1303_v6 = vpop.f32.mrf.mxu0 }
 0x5b2   : > { %v1307_v7 = vpack.c.bf16 %v1303_v6, %v1303_v6  ;;  %1230 = vrot.lane.b32.xlu2 %v1225_v5, %s2281_s21  ;;  %1148 = vrot.lane.b32.xlu0 %v1143_v3, %s2280_s20  ;;  %v2115_v5 = vld [vmem:[%s830_s30] ss:$0 sm:$0xff]  ;;  %s2847_s20 = sld [smem:[#allocation29_spill]] (!%p1999_p1) }
 0x5b4   : > { %1312 = vrot.lane.b32.xlu1 %v1307_v7, %s2282_s23 }
 0x5ba   : > { %1310 = vrot.lane.b32.xlu0 %v1306_v8, %s2282_s23 }
 0x60c   : > { %v1231_v15 = vpop.permute.xlu2 %1230 }
 0x60e   : > { %v1147_v10 = vpop.permute.xlu1 %1146 }
 0x60f   : > { %1153 = vst.msk [vmem:[#allocation3] sm:$0xf] %vm1152_vm12, %v1147_v10 }
 0x61c   : > { %v1229_v13 = vpop.permute.xlu0 %1228 }
 0x61d   : > { %1235 = vst.msk [vmem:[#allocation3] sm:$0xf] %vm1234_vm13, %v1229_v13 }
 0x624   : > { %v1149_v14 = vpop.permute.xlu0 %1148 }
 0x625   : > { %1154 = vst.msk [vmem:[#allocation3 + $0x4] sm:$0xf] %vm1152_vm12, %v1149_v14 }
 0x626   : > { %1236 = vst.msk [vmem:[#allocation3 + $0x4] sm:$0xf] %vm1234_vm13, %v1231_v15  ;;  %v1313_v16 = vpop.permute.xlu1 %1312 }
 0x627   : > { %1318 = vst.msk [vmem:[#allocation3 + $0x4] sm:$0xf] %vm1316_vm14, %v1313_v16 }
 0x62c   : > { %v1311_v17 = vpop.permute.xlu0 %1310 }
 0x62d   : > { %1317 = vst.msk [vmem:[#allocation3] sm:$0xf] %vm1316_vm14, %v1311_v17 }
 0x634   : > { %v2015_v18 = vld [vmem:[#allocation3] sm:$0xff] }
 0x635   : > { %1972 = vmatmul.msk.bf16.vlgmr.msra.gmra.mxu1 %vm853_vm1, %v2015_v18 }
 0x6b2   : > { %v1358_v20 = vpop.f32.mrf.mxu1 }
 0x6b3   : > { %v1359_v21 = vadd.f32 %v2112_v19, %v1358_v20 }
 0x6b5   : > { %v2625_v22 = vadd.f32 %v1359_v21, %v2532_v2 }
 0x6b7   : > { %v1367_v23 = vsel %vm853_vm1, %v2625_v22, 0.0 }
 0x6b8   : > { %1368 = vadd.xlane.f32.xlu2 %v1367_v23  ;;  %v2023_v23 = vld [vmem:[%s2528_s9 + $0x18] sm:$0xff] }
 0x6b9   : > { %1580 = vmatpush.bf16.msrb.mxu3 %v2023_v23 }
 0x6ba   : > { %v1360_v24 = vpop.f32.mrf.mxu1 }
 0x6bb   : > { %v1361_v25 = vadd.f32 %v2112_v19, %v1360_v24 }
 0x6bd   : > { %v2630_v26 = vadd.f32 %v1361_v25, %v2536_v4 }
 0x6bf   : > { %v1370_v27 = vsel %vm853_vm1, %v2630_v26, 0.0 }
 0x6c0   : > { %1371 = vadd.xlane.f32.xlu0 %v1370_v27 }
 0x72b   : > { %v1369_v28 = vpop.xlane.xlu2 %1368 }
 0x72c   : > { %v1373_v30 = vmul.f32 %v1369_v28, %v2540_v12 }
 0x72e   : > { %v1375_v2 = vsub.f32 %v2625_v22, %v1373_v30  ;;  %v2022_v30 = vld [vmem:[%s2528_s9 + $0x10] sm:$0xff] }
 0x72f   : > { %1581 = vmatpush.bf16.msrb.mxu3 %v2022_v30 }
 0x730   : > { %v1377_v31 = vmul.f32 %v1375_v2, %v1375_v2 }
 0x732   : > { %v1379_v32 = vsel %vm853_vm1, %v1377_v31, 0.0 }
 0x733   : > { %v1372_v33 = vpop.xlane.xlu0 %1371  ;;  %1380 = vadd.xlane.f32.xlu1 %v1379_v32 }
 0x734   : > { %v1374_v34 = vmul.f32 %v1372_v33, %v2540_v12 }
 0x736   : > { %v1376_v4 = vsub.f32 %v2630_v26, %v1374_v34 }
 0x738   : > { %v1378_v35 = vmul.f32 %v1376_v4, %v1376_v4 }
 0x73a   : > { %v1382_v36 = vsel %vm853_vm1, %v1378_v35, 0.0 }
 0x73b   : > { %1383 = vadd.xlane.f32.xlu2 %v1382_v36  ;;  %v2021_v36 = vld [vmem:[%s2528_s9 + $0x8] sm:$0xff] }
 0x73c   : > { %1582 = vmatpush.bf16.msrb.mxu3 %v2021_v36 }
 0x7a6   : > { %v1381_v38 = vpop.xlane.xlu1 %1380 }
 0x7a7   : > { %v1385_v39 = vmul.f32 %v1381_v38, %v2540_v12 }
 0x7a9   : > { %v1387_v40 = vadd.f32 1e-05, %v1385_v39 }
 0x7ab   : > { %2155 = vrsqrt.f32 %v1387_v40  ;;  %vm1395_vm0 = vweird.f32 %v1387_v40 }
 0x7ae   : > { %v1384_v42 = vpop.xlane.xlu2 %1383 }
 0x7af   : > { %v1386_v43 = vmul.f32 %v1384_v42, %v2540_v12 }
 0x7b1   : > { %v2156_v44 = vpop.eup %2155  ;;  %v1388_v45 = vadd.f32 1e-05, %v1386_v43 }
 0x7b2   : > { %v1390_v46 = vmul.f32 %v2156_v44, %v1387_v40  ;;  %vm1396_vm15 = vweird.f32 %v2156_v44 }
 0x7b3   : > { %2157 = vrsqrt.f32 %v1388_v45  ;;  %vm1397_vm2 = vmor %vm1395_vm0, %vm1396_vm15  ;;  %vm1405_vm4 = vweird.f32 %v1388_v45 }
 0x7b4   : > { %v1391_v47 = vmul.f32 %v2156_v44, %v1390_v46 }
 0x7b6   : > { %v1392_v48 = vmul.f32 0.5, %v1391_v47 }
 0x7b8   : > { %v1393_v49 = vsub.f32 1.5, %v1392_v48 }
 0x7b9   : > { %v2158_v29 = vpop.eup %2157 }
 0x7ba   : > { %v1394_v50 = vmul.f32 %v2156_v44, %v1393_v49  ;;  %v1400_v51 = vmul.f32 %v2158_v29, %v1388_v45  ;;  %vm1406_vm3 = vweird.f32 %v2158_v29 }
 0x7bb   : > { %vm1407_vm5 = vmor %vm1405_vm4, %vm1406_vm3 }
 0x7bc   : > { %v1401_v52 = vmul.f32 %v2158_v29, %v1400_v51  ;;  %v1398_v53 = vsel %vm1397_vm2, %v2156_v44, %v1394_v50  ;;  %v2020_v44 = vld [vmem:[%s2528_s9] sm:$0xff]  ;;  %vm1572_vm2 = vcmask 523264  }
 0x7bd   : > { %v1409_v57 = vmul.f32 %v1398_v53, %v1375_v2  ;;  %1583 = vmatpush.bf16.msrb.mxu3 %v2020_v44 }
 0x7be   : > { %v1402_v54 = vmul.f32 0.5, %v1401_v52 }
 0x7bf   : > { %v1414_v61 = vmul.f32 %v2113_v56, %v1409_v57 }
 0x7c0   : > { %v1403_v55 = vsub.f32 1.5, %v1402_v54 }
 0x7c1   : > { %v1419_v0 = vadd.f32 %v2114_v60, %v1414_v61 }
 0x7c2   : > { %v1404_v58 = vmul.f32 %v2158_v29, %v1403_v55 }
 0x7c4   : > { %v1408_v59 = vsel %vm1407_vm5, %v2158_v29, %v1404_v58 }
 0x7c5   : > { %v1410_v62 = vmul.f32 %v1408_v59, %v1376_v4 }
 0x7c7   : > { %v1415_v63 = vmul.f32 %v2113_v56, %v1410_v62 }
 0x7c9   : > { %v1420_v1 = vadd.f32 %v2114_v60, %v1415_v63 }
 0x7cb   : > { %v1421_v3 = vpack.c.bf16 %v1420_v1, %v1419_v0 }
 0x7cd   : > { %1981 = vmatmul.msk.bf16.vlgmr.msra.gmra.mxu2 %vm853_vm1, %v1421_v3 }
 0x850   : > { %v1454_v6 = vpop.f32.mrf.mxu2 }
 0x851   : > { %v2660_v7 = vadd.f32 %v2115_v5, %v1454_v6 }
 0x853   : > { %v2663_v8 = vmul.f32 0.70710677, %v2660_v7 }
 0x855   : > { %v1463_v9 = vand.u32 2147483647, %v2663_v8  ;;  %vm1529_vm15 = vcmp.lt.f32.partialorder %v2663_v8, 0.0  ;;  %v2116_v8 = vld [vmem:[%s838_s7] ss:$0 sm:$0xff] }
 0x857   : > { %v1465_v10 = vmul.f32 0.3275911, %v1463_v9  ;;  %v1517_v34 = vsub.f32 0.0, %v1463_v9 }
 0x858   : > { %v1456_v11 = vpop.f32.mrf.mxu2 }
 0x859   : > { %v1467_v13 = vadd.f32 1.0, %v1465_v10  ;;  %v2666_v14 = vadd.f32 %v2115_v5, %v1456_v11  ;;  %v1519_v40 = vmul.f32 %v1517_v34, %v1463_v9 }
 0x85b   : > { %2159 = vrcp.f32 %v1467_v13  ;;  %v2669_v15 = vmul.f32 0.70710677, %v2666_v14  ;;  %v1480_v24 = vand.u32 2147483648, %v1467_v13  ;;  %v1478_v27 = vand.u32 2147483647, %v1467_v13 }
 0x85c   : > { %vm1474_vm7 = vweird.f32 %v1467_v13  ;;  %v1521_v48 = vmul.f32 1.442695, %v1519_v40  ;;  %v1460_v23 = vmul.f32 0.5, %v2666_v14 }
 0x85d   : > { %v1464_v16 = vand.u32 2147483647, %v2669_v15  ;;  %v1481_v2 = vor.u32 1.1754944e-38, %v1480_v24  ;;  %vm1479_vm9 = vcmp.eq.f32.partialorder %v1478_v27, 8.507059e+37  ;;  %vm1530_vm0 = vcmp.lt.f32.partialorder %v2669_v15, 0.0 }
 0x85f   : > { %v1466_v17 = vmul.f32 0.3275911, %v1464_v16  ;;  %v1518_v51 = vsub.f32 0.0, %v1464_v16 }
 0x861   : > { %v2160_v18 = vpop.eup %2159  ;;  %v1468_v20 = vadd.f32 1.0, %v1466_v17  ;;  %v1520_v56 = vmul.f32 %v1518_v51, %v1464_v16 }
 0x862   : > { %v1470_v19 = vmul.f32 %v2160_v18, %v1467_v13  ;;  %vm1475_vm6 = vweird.f32 %v2160_v18 }
 0x863   : > { %2161 = vrcp.f32 %v1468_v20  ;;  %vm1476_vm8 = vmor %vm1474_vm7, %vm1475_vm6  ;;  %v1495_v39 = vand.u32 2147483648, %v1468_v20  ;;  %v1493_v42 = vand.u32 2147483647, %v1468_v20  ;;  %vm1489_vm12 = vweird.f32 %v1468_v20 }
 0x864   : > { %v1471_v21 = vsub.f32 1.0, %v1470_v19  ;;  %2163 = vpow2.f32 %v1521_v48  ;;  %v1523_v61 = vmul.f32 1.442695, %v1520_v56 }
 0x865   : > { %v1496_v47 = vor.u32 1.1754944e-38, %v1495_v39  ;;  %vm1494_vm14 = vcmp.eq.f32.partialorder %v1493_v42, 8.507059e+37 }
 0x866   : > { %v1472_v25 = vmul.f32 %v2160_v18, %v1471_v21  ;;  %2165 = vpow2.f32 %v1523_v61  ;;  %v1459_v21 = vmul.f32 0.5, %v2660_v7 }
 0x868   : > { %v1473_v28 = vadd.f32 %v2160_v18, %v1472_v25 }
 0x869   : > { %v2162_v31 = vpop.eup %2161 }
 0x86a   : > { %v1477_v32 = vsel %vm1476_vm8, %v2160_v18, %v1473_v28  ;;  %v1485_v4 = vmul.f32 %v2162_v31, %v1468_v20  ;;  %vm1490_vm11 = vweird.f32 %v2162_v31  ;;  %v2164_v62 = vpop.eup %2163 }
 0x86b   : > { %v1482_v33 = vsel %vm1479_vm9, %v1481_v2, %v1477_v32  ;;  %vm1491_vm13 = vmor %vm1489_vm12, %vm1490_vm11 }
 0x86c   : > { %v1499_v35 = vmul.f32 1.0614054, %v1482_v33  ;;  %v1486_v37 = vsub.f32 1.0, %v1485_v4  ;;  %v2166_v11 = vpop.eup %2165 }
 0x86e   : > { %v1501_v38 = vadd.f32 -1.4531521, %v1499_v35  ;;  %v1487_v41 = vmul.f32 %v2162_v31, %v1486_v37 }
 0x870   : > { %v1503_v43 = vmul.f32 %v1501_v38, %v1482_v33  ;;  %v1488_v45 = vadd.f32 %v2162_v31, %v1487_v41 }
 0x872   : > { %v1505_v46 = vadd.f32 1.4214138, %v1503_v43  ;;  %v1492_v49 = vsel %vm1491_vm13, %v2162_v31, %v1488_v45 }
 0x873   : > { %v1497_v50 = vsel %vm1494_vm14, %v1496_v47, %v1492_v49 }
 0x874   : > { %v1507_v29 = vmul.f32 %v1505_v46, %v1482_v33  ;;  %v1500_v52 = vmul.f32 1.0614054, %v1497_v50 }
 0x876   : > { %v1509_v53 = vadd.f32 -0.28449672, %v1507_v29  ;;  %v1502_v54 = vadd.f32 -1.4531521, %v1500_v52 }
 0x878   : > { %v1511_v55 = vmul.f32 %v1509_v53, %v1482_v33  ;;  %v1504_v57 = vmul.f32 %v1502_v54, %v1497_v50 }
 0x87a   : > { %v1513_v58 = vadd.f32 0.2548296, %v1511_v55  ;;  %v1506_v59 = vadd.f32 1.4214138, %v1504_v57 }
 0x87c   : > { %v1515_v60 = vmul.f32 %v1513_v58, %v1482_v33  ;;  %v1508_v63 = vmul.f32 %v1506_v59, %v1497_v50 }
 0x87e   : > { %v1525_v0 = vmul.f32 %v2164_v62, %v1515_v60  ;;  %v1510_v1 = vadd.f32 -0.28449672, %v1508_v63 }
 0x880   : > { %v1527_v3 = vsub.f32 1.0, %v1525_v0  ;;  %v1512_v5 = vmul.f32 %v1510_v1, %v1497_v50 }
 0x882   : > { %v1514_v6 = vadd.f32 0.2548296, %v1512_v5  ;;  %v1531_v9 = vsub.f32 0.0, %v1527_v3 }
 0x884   : > { %v1516_v10 = vmul.f32 %v1514_v6, %v1497_v50  ;;  %v1533_v16 = vsel %vm1529_vm15, %v1531_v9, %v1527_v3 }
 0x885   : > { %v1535_v19 = vadd.f32 1.0, %v1533_v16 }
 0x886   : > { %v1526_v13 = vmul.f32 %v2166_v11, %v1516_v10 }
 0x887   : > { %v1537_v25 = vmul.f32 %v1535_v19, %v1459_v21 }
 0x888   : > { %v1528_v17 = vsub.f32 1.0, %v1526_v13 }
 0x88a   : > { %v1532_v18 = vsub.f32 0.0, %v1528_v17 }
 0x88c   : > { %v1534_v20 = vsel %vm1530_vm0, %v1532_v18, %v1528_v17 }
 0x88d   : > { %v1536_v24 = vadd.f32 1.0, %v1534_v20 }
 0x88f   : > { %v1538_v27 = vmul.f32 %v1536_v24, %v1460_v23 }
 0x891   : > { %v1539_v28 = vpack.c.bf16 %v1538_v27, %v1537_v25 }
 0x893   : > { %1998 = vmatmul.msk.bf16.vlgmr.msrb.gmra.mxu3 %vm1572_vm2, %v1539_v28 }
 0x916   : > { %v1585_v30 = vpop.f32.mrf.mxu3 }
 0x917   : > { %v1590_v2 = vadd.f32 %v1585_v30, %v2625_v22 }
 0x919   : > { %v1596_v15 = vadd.f32 %v2116_v8, %v1590_v2 }
 0x91b   : > { %1598 = vst.msk [vmem:[#allocation2] sm:$0xff] %vm853_vm1, %v1596_v15 }
 0x91e   : > { %v1587_v7 = vpop.f32.mrf.mxu3 }
 0x91f   : > { %v1591_v14 = vadd.f32 %v1587_v7, %v2630_v26  ;;  %1603 = sbr.rel (%p1999_p1) target bundleno = 2760 (0xac8), region = 104 }
 0x921   : > { %v1597_v31 = vadd.f32 %v2116_v8, %v1591_v14 }
 0x923   : > { %1599 = vst.msk [vmem:[#allocation2 + $0x8] sm:$0xff] %vm853_vm1, %v1597_v31 }
 0x924   : > { %v1606_v32 = vsel %vm853_vm1, %v1596_v15, 0.0  ;;  %v1609_v33 = vsel %vm853_vm1, %v1597_v31, 0.0  ;;  %v1662_v29 = vld [vmem:[%s2846_s25] sm:$0xff]  ;;  %v2283_v51 = vmov 0  }
 0x925   : > { %1607 = vadd.xlane.f32.xlu0 %v1606_v32  ;;  %2167 = vset.pattern.permute.xlu2 %v2283_v51  ;;  %v2169_v60 = vld [vmem:[%s2847_s20] ss:$0 sm:$0xff] }
 0x926   : > { %2168 = vset.pattern.permute.xlu0 %v2283_v51  ;;  %1665 = vperm.xlu2 %2167, %v1662_v29   ;;  %v2170_v1 = vld [vmem:[%s2848_s1] ss:$0 sm:$0xff] }
 0x927   : > { %v1660_v11 = vld [vmem:[%s2849_s3] sm:$0xf] }
 0x92d   : > { %1610 = vadd.xlane.f32.xlu0 %v1609_v33 }
 0x980   : > { %v1666_v13 = vpop.permute.xlu2 %1665 }
 0x998   : > { %v1608_v34 = vpop.xlane.xlu0 %1607 }
 0x999   : > { %v1612_v22 = vmul.f32 %v1608_v34, %v2540_v12 }
 0x99b   : > { %v1614_v4 = vsub.f32 %v1596_v15, %v1612_v22 }
 0x99d   : > { %v1616_v35 = vmul.f32 %v1614_v4, %v1614_v4 }
 0x99f   : > { %v1618_v36 = vsel %vm853_vm1, %v1616_v35, 0.0 }
 0x9a0   : > { %1619 = vadd.xlane.f32.xlu1 %v1618_v36  ;;  %v1611_v26 = vpop.xlane.xlu0 %1610 }
 0x9a1   : > { %v1613_v37 = vmul.f32 %v1611_v26, %v2540_v12 }
 0x9a3   : > { %v1615_v38 = vsub.f32 %v1597_v31, %v1613_v37 }
 0x9a5   : > { %v1617_v39 = vmul.f32 %v1615_v38, %v1615_v38 }
 0x9a7   : > { %v1621_v40 = vsel %vm853_vm1, %v1617_v39, 0.0 }
 0x9a8   : > { %1622 = vadd.xlane.f32.xlu1 %v1621_v40 }
 0xa13   : > { %v1620_v41 = vpop.xlane.xlu1 %1619 }
 0xa14   : > { %v1624_v42 = vmul.f32 %v1620_v41, %v2540_v12 }
 0xa16   : > { %v1626_v43 = vadd.f32 1e-05, %v1624_v42 }
 0xa18   : > { %2171 = vrsqrt.f32 %v1626_v43  ;;  %vm1634_vm4 = vweird.f32 %v1626_v43 }
 0xa1b   : > { %v1623_v44 = vpop.xlane.xlu1 %1622 }
 0xa1c   : > { %v1625_v45 = vmul.f32 %v1623_v44, %v2540_v12 }
 0xa1e   : > { %v2172_v46 = vpop.eup %2171  ;;  %v1627_v47 = vadd.f32 1e-05, %v1625_v45 }
 0xa1f   : > { %v1629_v48 = vmul.f32 %v2172_v46, %v1626_v43  ;;  %vm1635_vm3 = vweird.f32 %v2172_v46 }
 0xa20   : > { %2173 = vrsqrt.f32 %v1627_v47  ;;  %vm1636_vm5 = vmor %vm1634_vm4, %vm1635_vm3  ;;  %vm1644_vm7 = vweird.f32 %v1627_v47 }
 0xa21   : > { %v1630_v49 = vmul.f32 %v2172_v46, %v1629_v48 }
 0xa23   : > { %v1631_v50 = vmul.f32 0.5, %v1630_v49 }
 0xa25   : > { %v1632_v52 = vsub.f32 1.5, %v1631_v50 }
 0xa26   : > { %v2174_v53 = vpop.eup %2173 }
 0xa27   : > { %v1633_v54 = vmul.f32 %v2172_v46, %v1632_v52  ;;  %v1639_v55 = vmul.f32 %v2174_v53, %v1627_v47  ;;  %vm1645_vm6 = vweird.f32 %v2174_v53 }
 0xa28   : > { %vm1646_vm8 = vmor %vm1644_vm7, %vm1645_vm6 }
 0xa29   : > { %v1640_v12 = vmul.f32 %v2174_v53, %v1639_v55  ;;  %v1637_v57 = vsel %vm1636_vm5, %v2172_v46, %v1633_v54 }
 0xa2a   : > { %v1648_v59 = vmul.f32 %v1637_v57, %v1614_v4 }
 0xa2b   : > { %v1641_v56 = vmul.f32 0.5, %v1640_v12 }
 0xa2c   : > { %v1653_v0 = vmul.f32 %v2169_v60, %v1648_v59 }
 0xa2d   : > { %v1642_v58 = vsub.f32 1.5, %v1641_v56 }
 0xa2e   : > { %v1658_v5 = vadd.f32 %v2170_v1, %v1653_v0 }
 0xa2f   : > { %v1643_v61 = vmul.f32 %v2174_v53, %v1642_v58 }
 0xa31   : > { %v1647_v62 = vsel %vm1646_vm8, %v2174_v53, %v1643_v61 }
 0xa32   : > { %v1649_v63 = vmul.f32 %v1647_v62, %v1615_v38 }
 0xa34   : > { %v1654_v3 = vmul.f32 %v2169_v60, %v1649_v63 }
 0xa36   : > { %v1659_v6 = vadd.f32 %v2170_v1, %v1654_v3 }
 0xa38   : > { %v1661_v9 = vpack.c.bf16 %v1659_v6, %v1658_v5 }
 0xa3a   : > { %v1672_v10 = vsel %vm853_vm1, %v1661_v9, 0 }
 0xa3b   : > { %1681 = vmatpush.bf16.xpose.msra.mxu0 %v1672_v10 }
 0xa42   : > { %2000 = vmatmul.msk.bf16.vlgmr.msra.gmra.mxu0 %vm853_vm1, %v1660_v11 }
 0xabf   : > { %v1683_v16 = vpop.f32.mrf.mxu0 }
 0xac0   : > { %v1684_v17 = vadd.f32 %v1683_v16, %v1666_v13 }
 0xac2   : > { %1687 = vst.msk [vmem:[%s781_s2] sm:$0xff] %vm1021_vm10, %v1684_v17 }
 0xac7   : > { %v1685_v18 = vpop.f32.mrf.mxu0 }
 0xac8 PF: > { %s2850_s15 = sld [smem:[#allocation11_spill]]  ;;  %s1701_s17 = sshll.u32 %s781_s2, 4  ;;  %s1702_s17 = int_to_ptr.vmem [resolvable:$true] %s1701_s17 }
 0xac9   : > { %s2851_s18 = sld [smem:[#allocation8_spill]] }
 0xaca   : > { %s2853_s16 = sld [smem:[#allocation33_spill]] }
 0xace   : > { %s2002_s28 = sshll.u32 %s2850_s15, 3 }
 0xacf   : > { %s2854_s19 = sand.u32 1, %s2851_s18  }
 0xad0   : > { %s1699_s9 = scalar_lea.hbm %s2853_s16, %s2002_s28  ;;  %s1689_s7 = scalar_lea.sflag [#allocation5], %s2854_s19 }
 0xad1   : > { %s1703_s30 = sshll.u32 %s1699_s9, 4  ;;  %s2195_s20 = scalar_lea.hbm %s2853_s16, 16  ;;  %s1704_s30 = int_to_ptr.hbm [resolvable:$true] %s1703_s30 }
 0xad2   : > { %s2189_s0 = sshra.s32 %s1704_s30, 4  ;;  %s2190_s0 = int_to_ptr.hbm [resolvable:$true] %s2189_s0 }
 0xad3   : > { %s2191_s25 = scalar_lea.hbm %s2190_s0, 8  ;;  %p2196_p6 = scmp.lt.s32.totalorder %s2190_s0, %s2853_s16 }
 0xad4   : > { %p2192_p2 = scmp.ne.s32.totalorder %s2190_s0, %s2191_s25  ;;  %p2197_p7 = scmp.lt.s32.totalorder %s2195_s20, %s2191_s25 }
 0xad6   : > { %p2193_p4 = pnand %p2192_p2, %p2433_p3  ;;  %p2198_p8 = por %p2197_p7, %p2196_p6 }
 0xad8   : > { %p2194_p5 = pneg %p2193_p4 }
 0xada   : > { %p2199_p10 = pnand %p2198_p8, %p2194_p5 }
 0xadc   : > { %2202 = shalt.err (!%p2199_p10)
}
 0xadd   : > { %2024 = dma.vmem_to_hbm [thread:$0]  (%p2433_p3), %s1702_s17, 128, %s1704_s30, %s1689_s7  }
 0xade PF: > { %s2855_s22 = sld [smem:[#allocation14_spill]] }
 0xadf   : > { %s2856_s2 = sld [smem:[#allocation7_spill]] }
 0xae4   : > { %p2030_p11 = scmp.ge.s32.totalorder %s2855_s22, 2 }
 0xae5   : > { %s1715_s27 = sand.u32 1, %s2856_s2  }
 0xae6   : > { %p2027_p12 = pnand %p2030_p11, %p2443_p9  ;;  %s1716_s24 = scalar_lea.sflag [#allocation5], %s1715_s27 }
 0xae8   : > { %p2028_p13 = pneg %p2027_p12 }
 0xaea   : > { %2236 = dma.done.wait (%p2028_p13), %s1716_s24, 128  }
 0xaeb   : > { %2238 = vsyncadd (%p2028_p13), %s1716_s24, 4294967168  ;;  %s32_s23 = sadd.s32 1, %s2855_s22   ;;  %s2858_s0 = sld [smem:[#allocation8_spill]] }
 0xaec   : > { %p29_p0 = scmp.ge.s32.totalorder %s32_s23, 6   ;;  %s2859_s30 = sld [smem:[#allocation9_spill]] }
 0xaed   : > { %s2860_s20 = sld [smem:[#allocation19_spill]] }
 0xaee   : > { %s2861_s21 = sld [smem:[#allocation12_spill]]  ;;  %31 = sbr.rel (!%p29_p0) target bundleno = 20 (0x14), region = 181 }
 0xaef   : > { %s2862_s1 = sld [smem:[#allocation13_spill]] }
 0xaf0   : > { %s2863_s22 = sld [smem:[#allocation15_spill]] }
 0xaf1   : > { %s2864_s2 = sld [smem:[#allocation17_spill]] }
 0xaf3   :  { %1722 = vsyncpa [#allocation5], 1 }
 0xaf4   :  { %1724 = vsyncpa [#allocation5 + $0x1], 1 }

</bundles_post_ra>
